<compile_context>
chip_gen: v7x
topology: tpu7x:2x2x1
jax: 0.10.0
libtpu: 0.0.40
codegen_flags: <defaults>
</compile_context>

<pallas_src>
import jax
import jax.numpy as jnp
from jax.experimental import pallas as pl
from jax.experimental.pallas import tpu as pltpu

HIDDEN = 1024


# ---------------------------------------------------------------------------
# Kernel
# ---------------------------------------------------------------------------
def _mlp_kernel(x_ref, w1_ref, b1_ref, w2_ref, b2_ref, w3_ref, b3_ref, o_ref,
                h1_acc):
    """Fused 3-layer MLP.  Grid = (batch_blocks, k_blocks).

    Layer 1 is K-tiled: each k step accumulates a (block_b, 1024) partial
    product into the f32 VMEM scratch.  Layers 2/3 + activations run only on
    the last k step; the output block is resident across the k axis.
    """
    k = pl.program_id(1)

    @pl.when(k == 0)
    def _init():
        h1_acc[...] = jnp.zeros_like(h1_acc)

    # Layer 1 partial: (block_b, tk) @ (tk, 1024), bf16 inputs, f32 accumulate.
    h1_acc[...] += jnp.dot(x_ref[...], w1_ref[...],
                           preferred_element_type=jnp.float32)

    @pl.when(k == pl.num_programs(1) - 1)
    def _finalize():
        # Dropout(0.5) -> identity in eval mode.  Elementwise math kept in f32
        # (v5e has no bf16 VPU/EUP path).
        h1 = jnp.maximum(h1_acc[...] + b1_ref[...], 0.0)               # ReLU
        h2 = jnp.dot(h1.astype(jnp.bfloat16), w2_ref[...],
                     preferred_element_type=jnp.float32) + b2_ref[...]
        h2 = jnp.maximum(h2, 0.0)                                      # ReLU
        # 1024 -> 1 head: VPU multiply + cross-lane (XLU) reduce.
        logits = jnp.sum(h2 * w3_ref[...], axis=-1, keepdims=True) + b3_ref[0, 0]
        o_ref[...] = jax.nn.sigmoid(logits).astype(o_ref.dtype)


# ---------------------------------------------------------------------------
# Spec / resource planning helpers
# ---------------------------------------------------------------------------
def _probe_pipeline_mode():
    try:
        pl.BlockSpec((8, 128), lambda i: (0, 0), pipeline_mode=pl.Buffered(1))
        return True
    except Exception:          # older JAX without pipeline_mode / Buffered
        return False


_HAS_PIPELINE_MODE = _probe_pipeline_mode()
# Buffer count actually used for grid-invariant operands; keeps the declared
# VMEM budget in sync with the specs even on the fallback path.
_CONST_BUFS = 1 if _HAS_PIPELINE_MODE else 2


def _spec(block_shape, index_map, *, buffers=2):
    if buffers != 2 and _HAS_PIPELINE_MODE:
        return pl.BlockSpec(block_shape, index_map,
                            pipeline_mode=pl.Buffered(buffers))
    return pl.BlockSpec(block_shape, index_map)


def _vmem_cap():
    """Per-generation usable VMEM: ~7/8 of physical (leave compiler headroom)."""
    try:
        phys = int(pltpu.get_tpu_info().vmem_capacity_bytes)
    except Exception:
        phys = 64 << 20                    # conservative: assume v7x per-TC VMEM
    return (phys * 7) // 8                 # ~112 MiB v5e/v6e, ~56 MiB v7x


def _vmem_need(block_b, in_feature, tk, num_blocks):
    """Raw VMEM requirement for one grid step (buffer counts match the specs)."""
    num_k = in_feature // tk
    total_steps = num_blocks * num_k
    x_bufs = 1 if (total_steps == 1 and _CONST_BUFS == 1) else 2
    w1_bufs = _CONST_BUFS if num_k == 1 else 2        # W1 grid-invariant only un-tiled
    need = x_bufs * block_b * tk * 2                  # x tile (bf16)
    need += 2 * block_b * 128 * 4                     # out tile (lane-padded f32)
    need += w1_bufs * tk * HIDDEN * 2                 # W1 tile (bf16)
    need += _CONST_BUFS * HIDDEN * HIDDEN * 2         # W2 (bf16)
    need += _CONST_BUFS * 3 * HIDDEN * 4              # b1, b2, w3 rows (f32)
    need += block_b * HIDDEN * 4                      # h1 accumulator scratch (f32)
    need += 2 * block_b * HIDDEN * 4                  # h1 / h2 live f32 temporaries
    return need


def _budget(need):
    return need * 3 // 2 + (4 << 20)                  # padding / spill headroom


def _pick_block_b(B):
    """Batch tile.

    Prefer >= 2 batch blocks whenever B splits into multiple-of-8 tiles: on
    v7x the "parallel" axis then shards across both TensorCores (~2x for
    small/medium batches); on v5e/v6e the extra grid step costs ~0.35us.
    Among valid splits take the biggest tile (fewest steps).
    """
    if B < 16 or B % 8 != 0:
        return B                                      # cannot split; single tile
    for cand in (512, 256, 128, 64, 32, 16, 8):
        if 2 * cand <= B and B % cand == 0:
            return cand
    return B


def _pick_tk(in_feature, block_b, num_blocks, cap):
    """K tile for layer 1: whole-K if it fits the budget, else largest clean tile."""
    if _budget(_vmem_need(block_b, in_feature, in_feature, num_blocks)) <= cap:
        return in_feature
    for tk in (4096, 2048, 1024, 512, 256, 128):
        if in_feature % tk == 0 and \
           _budget(_vmem_need(block_b, in_feature, tk, num_blocks)) <= cap:
            return tk
    # TODO(synk): in_feature that neither fits whole-K nor is a multiple of 128
    # would need a padded/ragged K tile; fall back to whole-K (may spill).
    return in_feature


def _plan(B, in_feature, block_b, tk):
    cap = _vmem_cap()
    if block_b is None:
        block_b = _pick_block_b(B)
    num_blocks = B // block_b
    if tk is None:
        tk = _pick_tk(in_feature, block_b, num_blocks, cap)
    num_k = in_feature // tk
    need = _vmem_need(block_b, in_feature, tk, num_blocks)
    vmem_bytes = int(min(max(_budget(need), 32 << 20), cap))
    return block_b, num_blocks, tk, num_k, vmem_bytes


# ---------------------------------------------------------------------------
# Public wrapper
# ---------------------------------------------------------------------------
def domain_discriminator_forward(x, params, *, block_b=None, tk=None):
    """x: (B, in_feature) float32 or bfloat16.  Returns (B, 1) float32."""
    B, in_feature = x.shape
    w1, b1, w2, b2, w3_row, b3 = params

    block_b, num_blocks, tk, num_k, vmem_bytes = _plan(B, in_feature, block_b, tk)

    assert B % block_b == 0, (
        f"ragged batches not supported: B={B} must be a multiple of "
        f"block_b={block_b}; pad the batch or pass block_b explicitly.")
    assert in_feature % tk == 0, (
        f"in_feature={in_feature} must be a multiple of tk={tk}")
    if num_blocks > 1:
        assert block_b % 8 == 0, "block_b must be a multiple of 8 when batch-tiled"
    if num_k > 1:
        assert tk % 128 == 0, "tk must be a multiple of 128 when K-tiled"

    # Stream x as bf16: halves x HBM traffic / VMEM tile and removes the
    # per-step (block_b x tk) VPU cast inside the kernel.
    if x.dtype != jnp.bfloat16:
        x = x.astype(jnp.bfloat16)

    total_steps = num_blocks * num_k
    x_bufs = 1 if total_steps == 1 else 2      # no double-buffering a 1-step grid
    w1_bufs = _CONST_BUFS if num_k == 1 else 2

    in_specs = [
        _spec((block_b, tk), lambda i, k: (i, k), buffers=x_bufs),      # x
        _spec((tk, HIDDEN), lambda i, k: (k, 0), buffers=w1_bufs),      # W1 (bf16)
        _spec((1, HIDDEN), lambda i, k: (0, 0), buffers=1),             # b1 (f32)
        _spec((HIDDEN, HIDDEN), lambda i, k: (0, 0), buffers=1),        # W2 (bf16)
        _spec((1, HIDDEN), lambda i, k: (0, 0), buffers=1),             # b2 (f32)
        _spec((1, HIDDEN), lambda i, k: (0, 0), buffers=1),             # w3 row (f32)
        pl.BlockSpec(memory_space=pltpu.MemorySpace.SMEM),              # b3 scalar
    ]
    out_spec = pl.BlockSpec((block_b, 1), lambda i, k: (i, 0))

    param_bytes = sum(int(p.size) * p.dtype.itemsize for p in params)
    cost = pl.CostEstimate(
        flops=2 * B * (in_feature * HIDDEN + HIDDEN * HIDDEN + HIDDEN),
        transcendentals=B,
        bytes_accessed=int(x.size) * 2 + param_bytes + B * 4,
    )

    return pl.pallas_call(
        _mlp_kernel,
        out_shape=jax.ShapeDtypeStruct((B, 1), jnp.float32),
        grid_spec=pltpu.PrefetchScalarGridSpec(
            num_scalar_prefetch=0,
            grid=(num_blocks, num_k),
            in_specs=in_specs,
            out_specs=out_spec,
            scratch_shapes=[pltpu.VMEM((block_b, HIDDEN), jnp.float32)],
        ),
        compiler_params=pltpu.CompilerParams(
            dimension_semantics=("parallel", "arbitrary"),
            vmem_limit_bytes=vmem_bytes,
        ),
        cost_estimate=cost,
    )(x, w1, b1, w2, b2, w3_row, b3)


# ---------------------------------------------------------------------------
# Params + pure-JAX reference (for the self-test)
# ---------------------------------------------------------------------------
def init_params(key, in_feature):
    """PyTorch-style init U(-1/sqrt(fan_in), 1/sqrt(fan_in)).

    W1/W2 stored (in, out) bf16; biases f32; W3 stored as a (1, 1024) f32 row.
    """
    k = jax.random.split(key, 6)

    def lin(kw, kb, fan_in, fan_out):
        bound = 1.0 / jnp.sqrt(jnp.asarray(fan_in, jnp.float32))
        w = jax.random.uniform(kw, (fan_in, fan_out), jnp.float32, -bound, bound)
        b = jax.random.uniform(kb, (1, fan_out), jnp.float32, -bound, bound)
        return w, b

    w1, b1 = lin(k[0], k[1], in_feature, HIDDEN)
    w2, b2 = lin(k[2], k[3], HIDDEN, HIDDEN)
    w3, b3 = lin(k[4], k[5], HIDDEN, 1)
    return (w1.astype(jnp.bfloat16), b1,
            w2.astype(jnp.bfloat16), b2,
            w3.T, b3)                          # w3 as (1, HIDDEN) row, b3 (1, 1)


def _reference(x, params):
    """Pure-JAX reference matching the kernel's bf16-input / f32-accum numerics."""
    w1, b1, w2, b2, w3_row, b3 = params
    xb = x.astype(jnp.bfloat16).astype(jnp.float32)
    h1 = jnp.maximum(xb @ w1.astype(jnp.float32) + b1, 0.0)
    h1b = h1.astype(jnp.bfloat16).astype(jnp.float32)
    h2 = jnp.maximum(h1b @ w2.astype(jnp.float32) + b2, 0.0)
    return jax.nn.sigmoid(h2 @ w3_row.T + b3)


if __name__ == "__main__":
    key = jax.random.PRNGKey(0)
    k_x, k_p, k_x2, k_p2 = jax.random.split(key, 4)

    # 1) Small smoke test: whole batch in one tile, grid (1, 1).
    B, in_feature = 8, 32
    x = jax.random.normal(k_x, (B, in_feature), jnp.float32)
    params = init_params(k_p, in_feature)
    out = jax.block_until_ready(domain_discriminator_forward(x, params))
    ref = _reference(x, params)
    assert out.shape == (B, 1)
    assert jnp.allclose(out, ref, atol=2e-3), "mismatch vs reference (small)"

    # 2) Multi-step grid on both axes: batch tiling + layer-1 K-tiling, grid (2, 2).
    B2, in_feature2 = 32, 256
    x2 = jax.random.normal(k_x2, (B2, in_feature2), jnp.float32)
    params2 = init_params(k_p2, in_feature2)
    out2 = jax.block_until_ready(
        domain_discriminator_forward(x2, params2, block_b=16, tk=128))
    ref2 = _reference(x2, params2)
    assert out2.shape == (B2, 1)
    assert jnp.allclose(out2, ref2, atol=2e-3), "mismatch vs reference (tiled)"

    # 3) Default planning path (auto block_b / tk / VMEM budget).
    out3 = jax.block_until_ready(domain_discriminator_forward(x2, params2))
    assert out3.shape == (B2, 1)
    assert jnp.allclose(out3, ref2, atol=2e-3), "mismatch vs reference (auto plan)"

    print("KERNEL_OK")
</pallas_src>

<mosaic_0001>
module attributes {stable_mosaic.version = 11 : i64} {
  func.func @_mlp_kernel(%arg0: i32, %arg1: i32, %arg2: memref<8x32xbf16, #tpu.memory_space<vmem>>, %arg3: memref<32x1024xbf16, #tpu.memory_space<vmem>>, %arg4: memref<1x1024xf32, #tpu.memory_space<vmem>>, %arg5: memref<1024x1024xbf16, #tpu.memory_space<vmem>>, %arg6: memref<1x1024xf32, #tpu.memory_space<vmem>>, %arg7: memref<1x1024xf32, #tpu.memory_space<vmem>>, %arg8: memref<1x1xf32, #tpu.memory_space<smem>>, %arg9: memref<8x1xf32, #tpu.memory_space<vmem>>, %arg10: memref<8x1024xf32, #tpu.memory_space<vmem>>) attributes {dimension_semantics = [#tpu.dimension_semantics<parallel>, #tpu.dimension_semantics<arbitrary>], iteration_bounds = array<i64: 1, 1>, scalar_prefetch = 0 : i64, scratch_operands = 1 : i64, tpu.core_type = #tpu.core_type<tc>, window_params = [{pipeline_mode = #tpu.pipeline_mode<synchronous>, transform_indices = @transform_0, window_bounds = array<i64: 8, 32>}, {pipeline_mode = #tpu.pipeline_mode<synchronous>, transform_indices = @transform_1, window_bounds = array<i64: 32, 1024>}, {pipeline_mode = #tpu.pipeline_mode<synchronous>, transform_indices = @transform_2, window_bounds = array<i64: 1, 1024>}, {pipeline_mode = #tpu.pipeline_mode<synchronous>, transform_indices = @transform_3, window_bounds = array<i64: 1024, 1024>}, {pipeline_mode = #tpu.pipeline_mode<synchronous>, transform_indices = @transform_4, window_bounds = array<i64: 1, 1024>}, {pipeline_mode = #tpu.pipeline_mode<synchronous>, transform_indices = @transform_5, window_bounds = array<i64: 1, 1024>}, {transform_indices = @transform_6, window_bounds = array<i64: 1, 1>}, {transform_indices = @transform_7, window_bounds = array<i64: 8, 1>}]} {
    %c0_i32 = arith.constant 0 : i32
    %0 = arith.cmpi eq, %arg1, %c0_i32 : i32
    %1 = arith.extui %0 : i1 to i32
    %c0_i32_0 = arith.constant 0 : i32
    %2 = arith.cmpi ne, %1, %c0_i32_0 : i32
    scf.if %2 {
      %cst_10 = arith.constant 0.000000e+00 : f32
      %12 = vector.broadcast %cst_10 : f32 to vector<8x1024xf32>
      %c0_11 = arith.constant 0 : index
      %c0_12 = arith.constant 0 : index
      %13 = vector.load %arg10[%c0_11, %c0_12] : memref<8x1024xf32, #tpu.memory_space<vmem>>, vector<8x1024xf32>
      tpu.vector_store %arg10[%c0_11, %c0_12], %12 {strides = array<i32>} : memref<8x1024xf32, #tpu.memory_space<vmem>>, vector<8x1024xf32>,
    } else {
    }
    %c0 = arith.constant 0 : index
    %c0_1 = arith.constant 0 : index
    %3 = vector.load %arg10[%c0, %c0_1] : memref<8x1024xf32, #tpu.memory_space<vmem>>, vector<8x1024xf32>
    %c0_2 = arith.constant 0 : index
    %c0_3 = arith.constant 0 : index
    %4 = vector.load %arg2[%c0_2, %c0_3] : memref<8x32xbf16, #tpu.memory_space<vmem>>, vector<8x32xbf16>
    %c0_4 = arith.constant 0 : index
    %c0_5 = arith.constant 0 : index
    %5 = vector.load %arg3[%c0_4, %c0_5] : memref<32x1024xbf16, #tpu.memory_space<vmem>>, vector<32x1024xbf16>
    %cst = arith.constant dense<0.000000e+00> : vector<8x1024xf32>
    %6 = tpu.matmul %4, %5, %cst {dimension_numbers = #tpu.dot_dimension_numbers<[1], [0], [0], [1], [0, 0, 1, 1], [], []>} : vector<8x32xbf16>, vector<32x1024xbf16>, vector<8x1024xf32> -> vector<8x1024xf32>
    %7 = arith.addf %3, %6 : vector<8x1024xf32>
    %c0_6 = arith.constant 0 : index
    %c0_7 = arith.constant 0 : index
    %8 = vector.load %arg10[%c0_6, %c0_7] : memref<8x1024xf32, #tpu.memory_space<vmem>>, vector<8x1024xf32>
    tpu.vector_store %arg10[%c0_6, %c0_7], %7 {strides = array<i32>} : memref<8x1024xf32, #tpu.memory_space<vmem>>, vector<8x1024xf32>,
    %c0_i32_8 = arith.constant 0 : i32
    %9 = arith.cmpi eq, %arg1, %c0_i32_8 : i32
    %10 = arith.extui %9 : i1 to i32
    %c0_i32_9 = arith.constant 0 : i32
    %11 = arith.cmpi ne, %10, %c0_i32_9 : i32
    scf.if %11 {
      %c0_10 = arith.constant 0 : index
      %c0_11 = arith.constant 0 : index
      %12 = vector.load %arg10[%c0_10, %c0_11] : memref<8x1024xf32, #tpu.memory_space<vmem>>, vector<8x1024xf32>
      %c0_12 = arith.constant 0 : index
      %c0_13 = arith.constant 0 : index
      %13 = vector.load %arg4[%c0_12, %c0_13] : memref<1x1024xf32, #tpu.memory_space<vmem>>, vector<1x1024xf32>
      %14 = vector.broadcast %13 : vector<1x1024xf32> to vector<8x1024xf32>
      %15 = arith.addf %12, %14 : vector<8x1024xf32>
      %cst_14 = arith.constant 0.000000e+00 : f32
      %16 = vector.broadcast %cst_14 : f32 to vector<8x1024xf32>
      %17 = arith.maximumf %15, %16 : vector<8x1024xf32>
      %18 = arith.truncf %17 : vector<8x1024xf32> to vector<8x1024xbf16>
      %c0_15 = arith.constant 0 : index
      %c0_16 = arith.constant 0 : index
      %19 = vector.load %arg5[%c0_15, %c0_16] : memref<1024x1024xbf16, #tpu.memory_space<vmem>>, vector<1024x1024xbf16>
      %cst_17 = arith.constant dense<0.000000e+00> : vector<8x1024xf32>
      %20 = tpu.matmul %18, %19, %cst_17 {dimension_numbers = #tpu.dot_dimension_numbers<[1], [0], [0], [1], [0, 0, 1, 1], [], []>} : vector<8x1024xbf16>, vector<1024x1024xbf16>, vector<8x1024xf32> -> vector<8x1024xf32>
      %c0_18 = arith.constant 0 : index
      %c0_19 = arith.constant 0 : index
      %21 = vector.load %arg6[%c0_18, %c0_19] : memref<1x1024xf32, #tpu.memory_space<vmem>>, vector<1x1024xf32>
      %22 = vector.broadcast %21 : vector<1x1024xf32> to vector<8x1024xf32>
      %23 = arith.addf %20, %22 : vector<8x1024xf32>
      %cst_20 = arith.constant 0.000000e+00 : f32
      %24 = vector.broadcast %cst_20 : f32 to vector<8x1024xf32>
      %25 = arith.maximumf %23, %24 : vector<8x1024xf32>
      %c0_21 = arith.constant 0 : index
      %c0_22 = arith.constant 0 : index
      %26 = vector.load %arg7[%c0_21, %c0_22] : memref<1x1024xf32, #tpu.memory_space<vmem>>, vector<1x1024xf32>
      %27 = vector.broadcast %26 : vector<1x1024xf32> to vector<8x1024xf32>
      %28 = arith.mulf %25, %27 : vector<8x1024xf32>
      %cst_23 = arith.constant dense<0.000000e+00> : vector<8xf32>
      %29 = vector.multi_reduction <add>, %28, %cst_23 [1] : vector<8x1024xf32> to vector<8xf32>
      %30 = vector.shape_cast %29 : vector<8xf32> to vector<8x1xf32>
      %c0_24 = arith.constant 0 : index
      %c0_25 = arith.constant 0 : index
      %31 = memref.load %arg8[%c0_24, %c0_25] : memref<1x1xf32, #tpu.memory_space<smem>>
      %32 = vector.broadcast %31 : f32 to vector<8x1xf32>
      %33 = arith.addf %30, %32 : vector<8x1xf32>
      %34 = arith.negf %33 : vector<8x1xf32>
      %35 = math.exp %34 : vector<8x1xf32>
      %cst_26 = arith.constant 1.000000e+00 : f32
      %36 = vector.broadcast %cst_26 : f32 to vector<8x1xf32>
      %37 = arith.addf %36, %35 : vector<8x1xf32>
      %38 = arith.divf %36, %37 : vector<8x1xf32>
      %c0_27 = arith.constant 0 : index
      %c0_28 = arith.constant 0 : index
      %39 = vector.load %arg9[%c0_27, %c0_28] : memref<8x1xf32, #tpu.memory_space<vmem>>, vector<8x1xf32>
      tpu.vector_store %arg9[%c0_27, %c0_28], %38 {strides = array<i32>} : memref<8x1xf32, #tpu.memory_space<vmem>>, vector<8x1xf32>,
    } else {
    }
    return
  }
  func.func @transform_0(%arg0: i32, %arg1: i32) -> (i32, i32) {
    %c0_i32 = arith.constant 0 : i32
    return %arg0, %arg1 : i32, i32
  }
  func.func @transform_1(%arg0: i32, %arg1: i32) -> (i32, i32) {
    %c0_i32 = arith.constant 0 : i32
    %c0_i32_0 = arith.constant 0 : i32
    return %arg1, %c0_i32 : i32, i32
  }
  func.func @transform_2(%arg0: i32, %arg1: i32) -> (i32, i32) {
    %c0_i32 = arith.constant 0 : i32
    %c0_i32_0 = arith.constant 0 : i32
    %c0_i32_1 = arith.constant 0 : i32
    return %c0_i32, %c0_i32_0 : i32, i32
  }
  func.func @transform_3(%arg0: i32, %arg1: i32) -> (i32, i32) {
    %c0_i32 = arith.constant 0 : i32
    %c0_i32_0 = arith.constant 0 : i32
    %c0_i32_1 = arith.constant 0 : i32
    return %c0_i32, %c0_i32_0 : i32, i32
  }
  func.func @transform_4(%arg0: i32, %arg1: i32) -> (i32, i32) {
    %c0_i32 = arith.constant 0 : i32
    %c0_i32_0 = arith.constant 0 : i32
    %c0_i32_1 = arith.constant 0 : i32
    return %c0_i32, %c0_i32_0 : i32, i32
  }
  func.func @transform_5(%arg0: i32, %arg1: i32) -> (i32, i32) {
    %c0_i32 = arith.constant 0 : i32
    %c0_i32_0 = arith.constant 0 : i32
    %c0_i32_1 = arith.constant 0 : i32
    return %c0_i32, %c0_i32_0 : i32, i32
  }
  func.func @transform_6(%arg0: i32, %arg1: i32) -> (i32, i32) {
    %c0_i32 = arith.constant 0 : i32
    %c0_i32_0 = arith.constant 0 : i32
    %c0_i32_1 = arith.constant 0 : i32
    return %c0_i32, %c0_i32_0 : i32, i32
  }
  func.func @transform_7(%arg0: i32, %arg1: i32) -> (i32, i32) {
    %c0_i32 = arith.constant 0 : i32
    %c0_i32_0 = arith.constant 0 : i32
    return %arg0, %c0_i32 : i32, i32
  }
}

</mosaic_0001>

<bundles_post_ra>
// kernel: tpu_custom_call.1
= control target key start
LH: loop header
LB: loop body
LE: loop exit
PB: predicated region body
PF: predicated region fallthrough
CT: control target
= control target key end

     0   :  { %13 = vsyncpa [#allocation5], 0  ;;  %s5355_s0 = inlined_call_operand.hbm [shape: bf16[8,32], index: 0, kind: input, shape index: {}]   ;;  %s5356_s1 = inlined_call_operand.hbm [shape: bf16[32,1024], index: 1, kind: input, shape index: {}]   ;;  %s5357_s2 = inlined_call_operand.hbm [shape: f32[1,1024], index: 2, kind: input, shape index: {}]   ;;  %s5358_s3 = inlined_call_operand.hbm [shape: bf16[1024,1024], index: 3, kind: input, shape index: {}]   ;;  %s5359_s4 = inlined_call_operand.hbm [shape: f32[1,1024], index: 4, kind: input, shape index: {}]   ;;  %s5360_s5 = inlined_call_operand.hbm [shape: f32[1,1024], index: 5, kind: input, shape index: {}]   ;;  %s5361_s6 = inlined_call_operand.<no memory space> [shape: f32[1,1], index: 6, kind: input, shape index: {}]   ;;  %s5362_s7 = inlined_call_operand.vmem [shape: f32[8,1], index: 7, kind: output, shape index: {}]  }
   0x1   :  { %14 = vsyncpa [#allocation7], 0 }
   0x2   :  { %15 = vsyncpa [#allocation10], 0 }
   0x3   :  { %16 = vsyncpa [#allocation13], 0  ;;  %s5079_s24 = smov [#allocation6]   ;;  %s4939_s28 = scalar_lea.hbm %s5356_s1, 2048 }
   0x4   :  { %s32_s25 = sshll.u32 %s5079_s24, 4  ;;  %p4940_p0 = scmp.ne.s32.totalorder %s5356_s1, %s4939_s28  ;;  %s33_s25 = int_to_ptr.vmem [resolvable:$true] %s32_s25 }
   0x5   :  { %p4943_p1 = scmp.lt.u32.totalorder %s4939_s28, %s5356_s1 }
   0x7   :  { %p4945_p2 = pnand %p4943_p1, %p4940_p0 }
   0x9   :  { %4948 = shalt.err (!%p4945_p2)
}
   0xa   :  { %s4949_s10 = scalar_lea.vmem %s33_s25, 2048  ;;  %p4954_p4 = scmp.lt.s32.totalorder %s33_s25, %s33_s25 }
   0xb   :  { %p4950_p3 = scmp.ne.s32.totalorder %s33_s25, %s4949_s10  ;;  %p4955_p5 = scmp.lt.s32.totalorder %s4949_s10, %s4949_s10 }
   0xd   :  { %p4956_p6 = por %p4955_p5, %p4954_p4 }
   0xf   :  { %p4957_p7 = pnand %p4956_p6, %p4950_p3 }
  0x11   :  { %4960 = shalt.err (!%p4957_p7)
}
  0x12   :  { %s5080_s11 = smov 512   ;;  %s5081_s12 = smov 32  }
  0x13   :  { %38 = dma.hbm_to_vmem [thread:$0]  %s5356_s1, 2048, %s33_s25, [#allocation7], %s5080_s11, %s5080_s11, %s5081_s12  }
  0x14   :  { %s5082_s15 = smov [#allocation9]   ;;  %s5083_s17 = smov [#allocation4]  }
  0x15   :  { %s54_s16 = sshll.u32 %s5082_s15, 4  ;;  %s23_s18 = sshll.u32 %s5083_s17, 4  ;;  %s55_s16 = int_to_ptr.vmem [resolvable:$true] %s54_s16  ;;  %s24_s18 = int_to_ptr.vmem [resolvable:$true] %s23_s18 }
  0x16   :  { %s4961_s21 = scalar_lea.hbm %s5358_s3, 65536 }
  0x17   :  { %p4962_p8 = scmp.ne.s32.totalorder %s5358_s3, %s4961_s21  ;;  %p4965_p9 = scmp.lt.u32.totalorder %s4961_s21, %s5358_s3 }
  0x19   :  { %p4967_p10 = pnand %p4965_p9, %p4962_p8 }
  0x1b   :  { %4970 = shalt.err (!%p4967_p10)
}
  0x1c   :  { %s4971_s1 = scalar_lea.vmem %s55_s16, 65536  ;;  %p4976_p12 = scmp.lt.s32.totalorder %s55_s16, %s55_s16 }
  0x1d   :  { %p4972_p11 = scmp.ne.s32.totalorder %s55_s16, %s4971_s1  ;;  %p4977_p13 = scmp.lt.s32.totalorder %s4971_s1, %s4971_s1 }
  0x1f   :  { %p4978_p0 = por %p4977_p13, %p4976_p12 }
  0x21   :  { %p4979_p1 = pnand %p4978_p0, %p4972_p11 }
  0x23   :  { %4982 = shalt.err (!%p4979_p1)
}
  0x24   :  { %60 = dma.hbm_to_vmem [thread:$0]  %s5358_s3, 65536, %s55_s16, [#allocation10], %s5080_s11, %s5080_s11, %s5081_s12  }
  0x25   :  { %s4983_s30 = scalar_lea.hbm %s5355_s0, 64 }
  0x26   :  { %p4984_p2 = scmp.ne.s32.totalorder %s5355_s0, %s4983_s30  ;;  %p4987_p3 = scmp.lt.u32.totalorder %s4983_s30, %s5355_s0 }
  0x28   :  { %p4989_p4 = pnand %p4987_p3, %p4984_p2 }
  0x2a   :  { %4992 = shalt.err (!%p4989_p4)
}
  0x2b   :  { %s4993_s14 = scalar_lea.vmem %s24_s18, 64  ;;  %p4998_p6 = scmp.lt.s32.totalorder %s24_s18, %s24_s18 }
  0x2c   :  { %p4994_p5 = scmp.ne.s32.totalorder %s24_s18, %s4993_s14  ;;  %p4999_p7 = scmp.lt.s32.totalorder %s4993_s14, %s4993_s14 }
  0x2e   :  { %p5000_p8 = por %p4999_p7, %p4998_p6 }
  0x30   :  { %p5001_p9 = pnand %p5000_p8, %p4994_p5 }
  0x32   :  { %5004 = shalt.err (!%p5001_p9)
}
  0x33   :  { %26 = dma.hbm_to_vmem [thread:$0]  %s5355_s0, 64, %s24_s18, [#allocation5]  }
  0x34   :  { %s5084_s12 = smov [#allocation8]   ;;  %s5085_s16 = smov [#allocation11]  }
  0x35   :  { %s45_s15 = sshll.u32 %s5084_s12, 4  ;;  %s67_s17 = sshll.u32 %s5085_s16, 4  ;;  %s46_s15 = int_to_ptr.vmem [resolvable:$true] %s45_s15  ;;  %s68_s17 = int_to_ptr.vmem [resolvable:$true] %s67_s17 }
  0x36   :  { %s5005_s21 = scalar_lea.hbm %s5357_s2, 128 }
  0x37   :  { %p5006_p10 = scmp.ne.s32.totalorder %s5357_s2, %s5005_s21  ;;  %p5009_p11 = scmp.lt.u32.totalorder %s5005_s21, %s5357_s2 }
  0x39   :  { %p5011_p12 = pnand %p5009_p11, %p5006_p10 }
  0x3b   :  { %5014 = shalt.err (!%p5011_p12)
}
  0x3c   :  { %s5015_s0 = scalar_lea.vmem %s46_s15, 128  ;;  %p5020_p0 = scmp.lt.s32.totalorder %s46_s15, %s46_s15 }
  0x3d   :  { %p5016_p13 = scmp.ne.s32.totalorder %s46_s15, %s5015_s0  ;;  %p5021_p1 = scmp.lt.s32.totalorder %s5015_s0, %s5015_s0 }
  0x3f   :  { %p5022_p2 = por %p5021_p1, %p5020_p0 }
  0x41   :  { %p5023_p3 = pnand %p5022_p2, %p5016_p13 }
  0x43   :  { %5026 = shalt.err (!%p5023_p3)
}
  0x44   :  { %48 = dma.hbm_to_vmem [thread:$0]  %s5357_s2, 128, %s46_s15, [#allocation7]  }
  0x45   :  { %s5027_s28 = scalar_lea.hbm %s5359_s4, 128 }
  0x46   :  { %p5028_p4 = scmp.ne.s32.totalorder %s5359_s4, %s5027_s28  ;;  %p5031_p5 = scmp.lt.u32.totalorder %s5027_s28, %s5359_s4 }
  0x48   :  { %p5033_p6 = pnand %p5031_p5, %p5028_p4 }
  0x4a   :  { %5036 = shalt.err (!%p5033_p6)
}
  0x4b   :  { %s5037_s10 = scalar_lea.vmem %s68_s17, 128  ;;  %p5042_p8 = scmp.lt.s32.totalorder %s68_s17, %s68_s17 }
  0x4c   :  { %p5038_p7 = scmp.ne.s32.totalorder %s68_s17, %s5037_s10  ;;  %p5043_p9 = scmp.lt.s32.totalorder %s5037_s10, %s5037_s10 }
  0x4e   :  { %p5044_p10 = por %p5043_p9, %p5042_p8 }
  0x50   :  { %p5045_p11 = pnand %p5044_p10, %p5038_p7 }
  0x52   :  { %5048 = shalt.err (!%p5045_p11)
}
  0x53   :  { %70 = dma.hbm_to_vmem [thread:$0]  %s5359_s4, 128, %s68_s17, [#allocation10]  }
  0x54   :  { %s5086_s14 = smov [#allocation12]   ;;  %s5049_s15 = scalar_lea.hbm %s5360_s5, 128 }
  0x55   :  { %s77_s3 = sshll.u32 %s5086_s14, 4  ;;  %p5050_p12 = scmp.ne.s32.totalorder %s5360_s5, %s5049_s15  ;;  %s78_s3 = int_to_ptr.vmem [resolvable:$true] %s77_s3 }
  0x56   :  { %p5053_p13 = scmp.lt.u32.totalorder %s5049_s15, %s5360_s5 }
  0x58   :  { %p5055_p0 = pnand %p5053_p13, %p5050_p12 }
  0x5a   :  { %5058 = shalt.err (!%p5055_p0)
}
  0x5b   :  { %s5059_s22 = scalar_lea.vmem %s78_s3, 128  ;;  %p5064_p2 = scmp.lt.s32.totalorder %s78_s3, %s78_s3 }
  0x5c   :  { %p5060_p1 = scmp.ne.s32.totalorder %s78_s3, %s5059_s22  ;;  %p5065_p3 = scmp.lt.s32.totalorder %s5059_s22, %s5059_s22 }
  0x5e   :  { %p5066_p4 = por %p5065_p3, %p5064_p2 }
  0x60   :  { %p5067_p5 = pnand %p5066_p4, %p5060_p1 }
  0x62   :  { %5070 = shalt.err (!%p5067_p5)
}
  0x63   :  { %80 = dma.hbm_to_vmem [thread:$0]  %s5360_s5, 128, %s78_s3, [#allocation13]  }
  0x64   :  { %5071 = dma.done.wait [#allocation5], 64  }
  0x65   :  { %5072 = vsyncadd [#allocation5], 4294967232 }
  0x66   :  { %5073 = dma.done.wait [#allocation7], 2176  }
  0x67   :  { %5074 = vsyncadd [#allocation7], 4294965120 }
  0x68   :  { %5075 = dma.done.wait [#allocation10], 65664  }
  0x69   :  { %5076 = vsyncadd [#allocation10], 4294901632 }
  0x6a   :  { %5077 = dma.done.wait [#allocation13], 128  }
  0x6b   :  { %5078 = vsyncadd [#allocation13], 4294967168  ;;  %v5087_v0 = vmov 0   ;;  %v123_v1 = vld [vmem:[#allocation6] sm:$0xff]  ;;  %v124_v7 = vld [vmem:[#allocation6 + $0x8] sm:$0xff]  ;;  %vm219_vm0 = vcmask 261120  }
  0x6c   :  { %255 = vmatprep.mubr.bf16.mxu0 %v5087_v0  ;;  %296 = vmatprep.mubr.bf16.mxu1 %v5087_v0  ;;  %v127_v2 = vld [vmem:[#allocation6 + $0x20] sm:$0xff]  ;;  %v128_v9 = vld [vmem:[#allocation6 + $0x28] sm:$0xff]  ;;  %v125_v15 = vld [vmem:[#allocation6 + $0x10] sm:$0xff]  ;;  %vm4326_vm1 = vcmask 7168  }
  0x6d   :  { %v131_v3 = vld [vmem:[#allocation6 + $0x40] sm:$0xff]  ;;  %v4337_v4 = vcombine.high %v123_v1, %v127_v2  ;;  %v4336_v5 = vcombine.low %v123_v1, %v127_v2  ;;  %v132_v10 = vld [vmem:[#allocation6 + $0x48] sm:$0xff]  ;;  %v4339_v12 = vcombine.high %v124_v7, %v128_v9  ;;  %v4338_v13 = vcombine.low %v124_v7, %v128_v9  ;;  %v129_v16 = vld [vmem:[#allocation6 + $0x30] sm:$0xff] }
  0x6e   :  { %v135_v6 = vld [vmem:[#allocation6 + $0x60] sm:$0xff]  ;;  %v136_v11 = vld [vmem:[#allocation6 + $0x68] sm:$0xff]  ;;  %v126_v18 = vld [vmem:[#allocation6 + $0x18] sm:$0xff]  ;;  %v4341_v20 = vcombine.high %v125_v15, %v129_v16  ;;  %v4340_v26 = vcombine.low %v125_v15, %v129_v16 }
  0x6f   :  { %v4345_v8 = vcombine.high %v131_v3, %v135_v6  ;;  %223 = vmatprep.subr.bf16.mxu0 %v4337_v4  ;;  %v4347_v14 = vcombine.high %v132_v10, %v136_v11  ;;  %v4344_v17 = vcombine.low %v131_v3, %v135_v6  ;;  %v130_v19 = vld [vmem:[#allocation6 + $0x38] sm:$0xff]  ;;  %264 = vmatprep.subr.bf16.mxu1 %v4339_v12  ;;  %v133_v22 = vld [vmem:[#allocation6 + $0x50] sm:$0xff]  ;;  %v480_v31 = vld [vmem:[#allocation9] sm:$0xff] }
  0x70   :  { %224 = vmatpush1.bf16.msra.mxu0 %v4336_v5  ;;  %265 = vmatpush1.bf16.msra.mxu1 %v4338_v13  ;;  %v4346_v21 = vcombine.low %v132_v10, %v136_v11  ;;  %v137_v23 = vld [vmem:[#allocation6 + $0x70] sm:$0xff]  ;;  %v4343_v24 = vcombine.high %v126_v18, %v130_v19  ;;  %v122_v25 = vld [vmem:[#allocation4] sm:$0xf]  ;;  %v4342_v30 = vcombine.low %v126_v18, %v130_v19  ;;  %v484_v32 = vld [vmem:[#allocation9 + $0x20] sm:$0xff] }
  0x71   :  { %225 = vmatprep.subr.bf16.mxu0 %v4345_v8  ;;  %266 = vmatprep.subr.bf16.mxu1 %v4347_v14  ;;  %v134_v27 = vld [vmem:[#allocation6 + $0x58] sm:$0xff]  ;;  %v4349_v29 = vcombine.high %v133_v22, %v137_v23  ;;  %v4348_v34 = vcombine.low %v133_v22, %v137_v23  ;;  %v481_v35 = vld [vmem:[#allocation9 + $0x8] sm:$0xff]  ;;  %v4357_v37 = vcombine.high %v480_v31, %v484_v32  ;;  %v488_v39 = vld [vmem:[#allocation9 + $0x40] sm:$0xff] }
  0x72   :  { %v138_v28 = vld [vmem:[#allocation6 + $0x78] sm:$0xff]  ;;  %v485_v36 = vld [vmem:[#allocation9 + $0x28] sm:$0xff]  ;;  %v492_v40 = vld [vmem:[#allocation9 + $0x60] sm:$0xff]  ;;  %v4356_v42 = vcombine.low %v480_v31, %v484_v32 }
  0x73   :  { %v4351_v33 = vcombine.high %v134_v27, %v138_v28  ;;  %v4350_v38 = vcombine.low %v134_v27, %v138_v28  ;;  %v4359_v41 = vcombine.high %v481_v35, %v485_v36  ;;  %v489_v43 = vld [vmem:[#allocation9 + $0x48] sm:$0xff]  ;;  %v4365_v45 = vcombine.high %v488_v39, %v492_v40  ;;  %v496_v47 = vld [vmem:[#allocation9 + $0x80] sm:$0xff] }
  0x74   :  { %226 = vmatpush1.bf16.msra.mxu0 %v4344_v17  ;;  %267 = vmatpush1.bf16.msra.mxu1 %v4346_v21  ;;  %v493_v44 = vld [vmem:[#allocation9 + $0x68] sm:$0xff]  ;;  %v4358_v46 = vcombine.low %v481_v35, %v485_v36  ;;  %v500_v48 = vld [vmem:[#allocation9 + $0xa0] sm:$0xff]  ;;  %v4364_v50 = vcombine.low %v488_v39, %v492_v40 }
  0x75   :  { %305 = vmatprep.subr.bf16.mxu0 %v4341_v20  ;;  %346 = vmatprep.subr.bf16.mxu1 %v4343_v24  ;;  %v4367_v49 = vcombine.high %v489_v43, %v493_v44  ;;  %v497_v51 = vld [vmem:[#allocation9 + $0x88] sm:$0xff]  ;;  %v4373_v53 = vcombine.high %v496_v47, %v500_v48  ;;  %v4366_v54 = vcombine.low %v489_v43, %v493_v44  ;;  %v504_v55 = vld [vmem:[#allocation9 + $0xc0] sm:$0xff] }
  0x76   :  { %v501_v52 = vld [vmem:[#allocation9 + $0xa8] sm:$0xff]  ;;  %v508_v56 = vld [vmem:[#allocation9 + $0xe0] sm:$0xff]  ;;  %v4372_v58 = vcombine.low %v496_v47, %v500_v48 }
  0x77   :  { %4352 = vmatmul.mubr.msk.bf16.vlgmr.msra.gmra.mrb[0].mxu0 %vm219_vm0, %v122_v25  ;;  %4353 = vmatmul.mubr.msk.bf16.vlgmr.msra.gmra.mrb[0].mxu1 %vm219_vm0, %v122_v25  ;;  %v4375_v57 = vcombine.high %v497_v51, %v501_v52  ;;  %v505_v59 = vld [vmem:[#allocation9 + $0xc8] sm:$0xff]  ;;  %v4381_v61 = vcombine.high %v504_v55, %v508_v56  ;;  %v4374_v62 = vcombine.low %v497_v51, %v501_v52  ;;  %v512_v63 = vld [vmem:[#allocation9 + $0x100] sm:$0xff] }
  0x78   :  { %306 = vmatpush1.bf16.msra.mxu0 %v4340_v26  ;;  %337 = vmatprep.mubr.bf16.mxu0 %v5087_v0  ;;  %v509_v60 = vld [vmem:[#allocation9 + $0xe8] sm:$0xff]  ;;  %v4380_v2 = vcombine.low %v504_v55, %v508_v56  ;;  %v520_v7 = vld [vmem:[#allocation9 + $0x140] sm:$0xff] }
  0x79   :  { %307 = vmatprep.subr.bf16.mxu0 %v4349_v29  ;;  %347 = vmatpush1.bf16.msra.mxu1 %v4342_v30  ;;  %v4383_v1 = vcombine.high %v505_v59, %v509_v60  ;;  %v513_v3 = vld [vmem:[#allocation9 + $0x108] sm:$0xff]  ;;  %v4382_v6 = vcombine.low %v505_v59, %v509_v60  ;;  %v524_v8 = vld [vmem:[#allocation9 + $0x160] sm:$0xff] }
  0x7a   :  { %378 = vmatprep.mubr.bf16.mxu1 %v5087_v0  ;;  %348 = vmatprep.subr.bf16.mxu1 %v4351_v33  ;;  %v516_v0 = vld [vmem:[#allocation9 + $0x120] sm:$0xff]  ;;  %v517_v4 = vld [vmem:[#allocation9 + $0x128] sm:$0xff]  ;;  %v4397_v13 = vcombine.high %v520_v7, %v524_v8  ;;  %v4396_v18 = vcombine.low %v520_v7, %v524_v8 }
  0x7b   :  { %v4389_v5 = vcombine.high %v512_v63, %v516_v0  ;;  %v4391_v9 = vcombine.high %v513_v3, %v517_v4  ;;  %v4388_v10 = vcombine.low %v512_v63, %v516_v0  ;;  %v521_v11 = vld [vmem:[#allocation9 + $0x148] sm:$0xff]  ;;  %v4390_v14 = vcombine.low %v513_v3, %v517_v4  ;;  %v528_v15 = vld [vmem:[#allocation9 + $0x180] sm:$0xff] }
  0x7c   :  { %308 = vmatpush1.bf16.msra.mxu0 %v4348_v34  ;;  %v525_v12 = vld [vmem:[#allocation9 + $0x168] sm:$0xff]  ;;  %v532_v16 = vld [vmem:[#allocation9 + $0x1a0] sm:$0xff] }
  0x7d   :  { %3594 = vmatprep.subr.bf16.mxu0 %v4357_v37  ;;  %349 = vmatpush1.bf16.msra.mxu1 %v4350_v38  ;;  %v4399_v17 = vcombine.high %v521_v11, %v525_v12  ;;  %v529_v19 = vld [vmem:[#allocation9 + $0x188] sm:$0xff]  ;;  %v4405_v21 = vcombine.high %v528_v15, %v532_v16  ;;  %v4398_v22 = vcombine.low %v521_v11, %v525_v12  ;;  %v536_v23 = vld [vmem:[#allocation9 + $0x1c0] sm:$0xff] }
  0x7e   :  { %3758 = vmatprep.subr.bf16.mxu1 %v4359_v41  ;;  %v533_v20 = vld [vmem:[#allocation9 + $0x1a8] sm:$0xff]  ;;  %v540_v24 = vld [vmem:[#allocation9 + $0x1e0] sm:$0xff]  ;;  %v4404_v26 = vcombine.low %v528_v15, %v532_v16 }
  0x7f   :  { %4354 = vmatmul.mubr.msk.bf16.vlgmr.msra.gmra.mrb[4].mxu0 %vm219_vm0, %v122_v25  ;;  %v537_v27 = vld [vmem:[#allocation9 + $0x1c8] sm:$0xff]  ;;  %v4413_v29 = vcombine.high %v536_v23, %v540_v24  ;;  %v4406_v30 = vcombine.low %v529_v19, %v533_v20  ;;  %v544_v31 = vld [vmem:[#allocation9 + $0x200] sm:$0xff]  ;;  %v4412_v34 = vcombine.low %v536_v23, %v540_v24 }
  0x80   :  { %3595 = vmatpush1.bf16.msra.mxu0 %v4356_v42  ;;  %4355 = vmatmul.mubr.msk.bf16.vlgmr.msra.gmra.mrb[4].mxu1 %vm219_vm0, %v122_v25  ;;  %v4407_v25 = vcombine.high %v529_v19, %v533_v20  ;;  %v541_v28 = vld [vmem:[#allocation9 + $0x1e8] sm:$0xff]  ;;  %v548_v32 = vld [vmem:[#allocation9 + $0x220] sm:$0xff] }
  0x81   :  { %3596 = vmatprep.subr.bf16.mxu0 %v4365_v45  ;;  %3759 = vmatpush1.bf16.msra.mxu1 %v4358_v46  ;;  %v4415_v33 = vcombine.high %v537_v27, %v541_v28  ;;  %v545_v35 = vld [vmem:[#allocation9 + $0x208] sm:$0xff]  ;;  %v4421_v37 = vcombine.high %v544_v31, %v548_v32  ;;  %v4414_v38 = vcombine.low %v537_v27, %v541_v28  ;;  %v552_v39 = vld [vmem:[#allocation9 + $0x240] sm:$0xff] }
  0x82   :  { %3760 = vmatprep.subr.bf16.mxu1 %v4367_v49  ;;  %v549_v36 = vld [vmem:[#allocation9 + $0x228] sm:$0xff]  ;;  %v556_v40 = vld [vmem:[#allocation9 + $0x260] sm:$0xff]  ;;  %v4420_v42 = vcombine.low %v544_v31, %v548_v32 }
  0x83   :  { %v4423_v41 = vcombine.high %v545_v35, %v549_v36  ;;  %v553_v43 = vld [vmem:[#allocation9 + $0x248] sm:$0xff]  ;;  %v4429_v45 = vcombine.high %v552_v39, %v556_v40  ;;  %v4422_v46 = vcombine.low %v545_v35, %v549_v36  ;;  %v560_v47 = vld [vmem:[#allocation9 + $0x280] sm:$0xff] }
  0x84   :  { %3597 = vmatpush1.bf16.msra.mxu0 %v4364_v50  ;;  %v557_v44 = vld [vmem:[#allocation9 + $0x268] sm:$0xff]  ;;  %v564_v48 = vld [vmem:[#allocation9 + $0x2a0] sm:$0xff]  ;;  %v4428_v50 = vcombine.low %v552_v39, %v556_v40 }
  0x85   :  { %3598 = vmatprep.subr.bf16.mxu0 %v4373_v53  ;;  %3761 = vmatpush1.bf16.msra.mxu1 %v4366_v54  ;;  %v4431_v49 = vcombine.high %v553_v43, %v557_v44  ;;  %v561_v51 = vld [vmem:[#allocation9 + $0x288] sm:$0xff]  ;;  %v4437_v53 = vcombine.high %v560_v47, %v564_v48  ;;  %v4430_v54 = vcombine.low %v553_v43, %v557_v44  ;;  %v568_v55 = vld [vmem:[#allocation9 + $0x2c0] sm:$0xff] }
  0x86   :  { %3762 = vmatprep.subr.bf16.mxu1 %v4375_v57  ;;  %v565_v52 = vld [vmem:[#allocation9 + $0x2a8] sm:$0xff]  ;;  %v572_v56 = vld [vmem:[#allocation9 + $0x2e0] sm:$0xff] }
  0x87   :  { %v4439_v57 = vcombine.high %v561_v51, %v565_v52  ;;  %v569_v59 = vld [vmem:[#allocation9 + $0x2c8] sm:$0xff]  ;;  %v576_v63 = vld [vmem:[#allocation9 + $0x300] sm:$0xff] }
  0x88   :  { %3599 = vmatpush1.bf16.msra.mxu0 %v4372_v58  ;;  %v4436_v58 = vcombine.low %v560_v47, %v564_v48  ;;  %v573_v60 = vld [vmem:[#allocation9 + $0x2e8] sm:$0xff]  ;;  %v580_v0 = vld [vmem:[#allocation9 + $0x320] sm:$0xff] }
  0x89   :  { %3600 = vmatprep.subr.bf16.mxu0 %v4381_v61  ;;  %3763 = vmatpush1.bf16.msra.mxu1 %v4374_v62  ;;  %v4445_v61 = vcombine.high %v568_v55, %v572_v56  ;;  %v4438_v62 = vcombine.low %v561_v51, %v565_v52  ;;  %v577_v3 = vld [vmem:[#allocation9 + $0x308] sm:$0xff]  ;;  %v584_v7 = vld [vmem:[#allocation9 + $0x340] sm:$0xff] }
  0x8a   :  { %3764 = vmatprep.subr.bf16.mxu1 %v4383_v1  ;;  %v4447_v1 = vcombine.high %v569_v59, %v573_v60  ;;  %v581_v4 = vld [vmem:[#allocation9 + $0x328] sm:$0xff]  ;;  %v588_v8 = vld [vmem:[#allocation9 + $0x360] sm:$0xff] }
  0x8b   :  { %v585_v11 = vld [vmem:[#allocation9 + $0x348] sm:$0xff]  ;;  %v4460_v16 = vcombine.low %v584_v7, %v588_v8  ;;  %v596_v19 = vld [vmem:[#allocation9 + $0x3a0] sm:$0xff] }
  0x8c   :  { %3601 = vmatpush1.bf16.msra.mxu0 %v4380_v2  ;;  %v4444_v2 = vcombine.low %v568_v55, %v572_v56  ;;  %v589_v12 = vld [vmem:[#allocation9 + $0x368] sm:$0xff]  ;;  %v604_v27 = vld [vmem:[#allocation9 + $0x3e0] sm:$0xff] }
  0x8d   :  { %3602 = vmatprep.subr.bf16.mxu0 %v4389_v5  ;;  %3765 = vmatpush1.bf16.msra.mxu1 %v4382_v6  ;;  %v4453_v5 = vcombine.high %v576_v63, %v580_v0  ;;  %v4446_v6 = vcombine.low %v569_v59, %v573_v60  ;;  %v4463_v15 = vcombine.high %v585_v11, %v589_v12  ;;  %v593_v20 = vld [vmem:[#allocation9 + $0x388] sm:$0xff]  ;;  %v612_v35 = vld [vmem:[#allocation9 + $0x420] sm:$0xff] }
  0x8e   :  { %3766 = vmatprep.subr.bf16.mxu1 %v4391_v9  ;;  %v4455_v9 = vcombine.high %v577_v3, %v581_v4  ;;  %v601_v28 = vld [vmem:[#allocation9 + $0x3c8] sm:$0xff]  ;;  %v616_v59 = vld [vmem:[#allocation9 + $0x440] sm:$0xff] }
  0x8f   :  { %v609_v36 = vld [vmem:[#allocation9 + $0x408] sm:$0xff] }
  0x90   :  { %3603 = vmatpush1.bf16.msra.mxu0 %v4388_v10  ;;  %v4452_v10 = vcombine.low %v576_v63, %v580_v0  ;;  %v617_v63 = vld [vmem:[#allocation9 + $0x448] sm:$0xff] }
  0x91   :  { %3604 = vmatprep.subr.bf16.mxu0 %v4397_v13  ;;  %3767 = vmatpush1.bf16.msra.mxu1 %v4390_v14  ;;  %v4461_v13 = vcombine.high %v584_v7, %v588_v8  ;;  %v4454_v14 = vcombine.low %v577_v3, %v581_v4  ;;  %v621_v0 = vld [vmem:[#allocation9 + $0x468] sm:$0xff] }
  0x92   :  { %3768 = vmatprep.subr.bf16.mxu1 %v4399_v17  ;;  %v4462_v17 = vcombine.low %v585_v11, %v589_v12  ;;  %v4495_v8 = vcombine.high %v617_v63, %v621_v0  ;;  %v625_v11 = vld [vmem:[#allocation9 + $0x488] sm:$0xff] }
  0x93   :  { %v629_v12 = vld [vmem:[#allocation9 + $0x4a8] sm:$0xff] }
  0x94   :  { %3605 = vmatpush1.bf16.msra.mxu0 %v4396_v18  ;;  %v592_v18 = vld [vmem:[#allocation9 + $0x380] sm:$0xff] }
  0x95   :  { %3606 = vmatprep.subr.bf16.mxu0 %v4405_v21  ;;  %3769 = vmatpush1.bf16.msra.mxu1 %v4398_v22  ;;  %v4469_v21 = vcombine.high %v592_v18, %v596_v19  ;;  %v597_v22 = vld [vmem:[#allocation9 + $0x3a8] sm:$0xff]  ;;  %v4468_v23 = vcombine.low %v592_v18, %v596_v19 }
  0x96   :  { %3770 = vmatprep.subr.bf16.mxu1 %v4407_v25  ;;  %v4470_v24 = vcombine.low %v593_v20, %v597_v22  ;;  %v4471_v25 = vcombine.high %v593_v20, %v597_v22  ;;  %v4503_v20 = vcombine.high %v625_v11, %v629_v12 }
  0x98   :  { %3607 = vmatpush1.bf16.msra.mxu0 %v4404_v26  ;;  %v600_v26 = vld [vmem:[#allocation9 + $0x3c0] sm:$0xff] }
  0x99   :  { %3608 = vmatprep.subr.bf16.mxu0 %v4413_v29  ;;  %3771 = vmatpush1.bf16.msra.mxu1 %v4406_v30  ;;  %v4477_v29 = vcombine.high %v600_v26, %v604_v27  ;;  %v605_v30 = vld [vmem:[#allocation9 + $0x3e8] sm:$0xff]  ;;  %v4476_v31 = vcombine.low %v600_v26, %v604_v27  ;;  %v4502_v27 = vcombine.low %v625_v11, %v629_v12 }
  0x9a   :  { %3772 = vmatprep.subr.bf16.mxu1 %v4415_v33  ;;  %v4478_v32 = vcombine.low %v601_v28, %v605_v30  ;;  %v4479_v33 = vcombine.high %v601_v28, %v605_v30  ;;  %v640_v30 = vld [vmem:[#allocation9 + $0x500] sm:$0xff]  ;;  %v673_v11 = vld [vmem:[#allocation9 + $0x608] sm:$0xff] }
  0x9b   :  { %v677_v12 = vld [vmem:[#allocation9 + $0x628] sm:$0xff] }
  0x9c   :  { %3609 = vmatpush1.bf16.msra.mxu0 %v4412_v34  ;;  %v608_v34 = vld [vmem:[#allocation9 + $0x400] sm:$0xff] }
  0x9d   :  { %3610 = vmatprep.subr.bf16.mxu0 %v4421_v37  ;;  %3773 = vmatpush1.bf16.msra.mxu1 %v4414_v38  ;;  %v4485_v37 = vcombine.high %v608_v34, %v612_v35  ;;  %v613_v38 = vld [vmem:[#allocation9 + $0x428] sm:$0xff]  ;;  %v4484_v39 = vcombine.low %v608_v34, %v612_v35 }
  0x9e   :  { %3774 = vmatprep.subr.bf16.mxu1 %v4423_v41  ;;  %v4486_v40 = vcombine.low %v609_v36, %v613_v38  ;;  %v4487_v41 = vcombine.high %v609_v36, %v613_v38  ;;  %v648_v38 = vld [vmem:[#allocation9 + $0x540] sm:$0xff] }
  0xa0   :  { %3611 = vmatpush1.bf16.msra.mxu0 %v4420_v42  ;;  %v416_v42 = vlaneseq }
  0xa1   :  { %3612 = vmatprep.subr.bf16.mxu0 %v4429_v45  ;;  %3775 = vmatpush1.bf16.msra.mxu1 %v4422_v46  ;;  %v5209_v45 = vld [vmem:[#allocation8] sm:$0xff] }
  0xa2   :  { %3776 = vmatprep.subr.bf16.mxu1 %v4431_v49  ;;  %v5204_v43 = vshrl.u32 %v416_v42, 7 }
  0xa4   :  { %3613 = vmatpush1.bf16.msra.mxu0 %v4428_v50  ;;  %v5207_v44 = vsub.s32 0, %v5204_v43  ;;  %v5212_v46 = vsub.s32 1, %v5204_v43  ;;  %v5215_v47 = vsub.s32 3, %v5204_v43 }
  0xa5   :  { %3614 = vmatprep.subr.bf16.mxu0 %v4437_v53  ;;  %3777 = vmatpush1.bf16.msra.mxu1 %v4430_v54 }
  0xa6   :  { %3778 = vmatprep.subr.bf16.mxu1 %v4439_v57  ;;  %v419_v48 = vrot.slane %v5209_v45, %v5207_v44  ;;  %v423_v49 = vrot.slane %v5209_v45, %v5212_v46  ;;  %v431_v51 = vrot.slane %v5209_v45, %v5215_v47 }
  0xa8   :  { %3615 = vmatpush1.bf16.msra.mxu0 %v4436_v58 }
  0xa9   :  { %3616 = vmatprep.subr.bf16.mxu0 %v4445_v61  ;;  %3779 = vmatpush1.bf16.msra.mxu1 %v4438_v62  ;;  %v620_v62 = vld [vmem:[#allocation9 + $0x460] sm:$0xff] }
  0xaa   :  { %3780 = vmatprep.subr.bf16.mxu1 %v4447_v1  ;;  %v4493_v7 = vcombine.high %v616_v59, %v620_v62 }
  0xac   :  { %3617 = vmatpush1.bf16.msra.mxu0 %v4444_v2 }
  0xad   :  { %3618 = vmatprep.subr.bf16.mxu0 %v4453_v5  ;;  %3781 = vmatpush1.bf16.msra.mxu1 %v4446_v6 }
  0xae   :  { %3782 = vmatprep.subr.bf16.mxu1 %v4455_v9  ;;  %v624_v9 = vld [vmem:[#allocation9 + $0x480] sm:$0xff] }
  0xb0   :  { %3619 = vmatpush1.bf16.msra.mxu0 %v4452_v10  ;;  %v628_v10 = vld [vmem:[#allocation9 + $0x4a0] sm:$0xff] }
  0xb1   :  { %3620 = vmatprep.subr.bf16.mxu0 %v4461_v13  ;;  %3783 = vmatpush1.bf16.msra.mxu1 %v4454_v14  ;;  %v4501_v19 = vcombine.high %v624_v9, %v628_v10  ;;  %v4500_v26 = vcombine.low %v624_v9, %v628_v10  ;;  %v676_v10 = vld [vmem:[#allocation9 + $0x620] sm:$0xff] }
  0xb2   :  { %3784 = vmatprep.subr.bf16.mxu1 %v4463_v15 }
  0xb4   :  { %3621 = vmatpush1.bf16.msra.mxu0 %v4460_v16  ;;  %v4492_v16 = vcombine.low %v616_v59, %v620_v62  ;;  %v668_v62 = vld [vmem:[#allocation9 + $0x5e0] sm:$0xff] }
  0xb5   :  { %3785 = vmatpush1.bf16.msra.mxu1 %v4462_v17  ;;  %3622 = vmatprep.subr.bf16.mxu0 %v4469_v21  ;;  %v4494_v17 = vcombine.low %v617_v63, %v621_v0  ;;  %v632_v21 = vld [vmem:[#allocation9 + $0x4c0] sm:$0xff]  ;;  %v665_v63 = vld [vmem:[#allocation9 + $0x5c8] sm:$0xff] }
  0xb6   :  { %3786 = vmatprep.subr.bf16.mxu1 %v4471_v25  ;;  %v637_v25 = vld [vmem:[#allocation9 + $0x4e8] sm:$0xff] }
  0xb7   :  { %v669_v0 = vld [vmem:[#allocation9 + $0x5e8] sm:$0xff] }
  0xb8   :  { %3623 = vmatpush1.bf16.msra.mxu0 %v4468_v23  ;;  %v636_v23 = vld [vmem:[#allocation9 + $0x4e0] sm:$0xff] }
  0xb9   :  { %3787 = vmatpush1.bf16.msra.mxu1 %v4470_v24  ;;  %3624 = vmatprep.subr.bf16.mxu0 %v4477_v29  ;;  %v633_v24 = vld [vmem:[#allocation9 + $0x4c8] sm:$0xff]  ;;  %v4509_v28 = vcombine.high %v632_v21, %v636_v23  ;;  %v4508_v34 = vcombine.low %v632_v21, %v636_v23  ;;  %v680_v21 = vld [vmem:[#allocation9 + $0x640] sm:$0xff] }
  0xba   :  { %3788 = vmatprep.subr.bf16.mxu1 %v4479_v33  ;;  %v4511_v29 = vcombine.high %v633_v24, %v637_v25  ;;  %v645_v33 = vld [vmem:[#allocation9 + $0x528] sm:$0xff]  ;;  %v4510_v35 = vcombine.low %v633_v24, %v637_v25 }
  0xbb   :  { %v681_v23 = vld [vmem:[#allocation9 + $0x648] sm:$0xff] }
  0xbc   :  { %3625 = vmatpush1.bf16.msra.mxu0 %v4476_v31  ;;  %v644_v31 = vld [vmem:[#allocation9 + $0x520] sm:$0xff]  ;;  %v685_v24 = vld [vmem:[#allocation9 + $0x668] sm:$0xff] }
  0xbd   :  { %3789 = vmatpush1.bf16.msra.mxu1 %v4478_v32  ;;  %3635 = vmatprep.subr.bf16.mxu0 %v4485_v37  ;;  %v641_v32 = vld [vmem:[#allocation9 + $0x508] sm:$0xff]  ;;  %v4517_v36 = vcombine.high %v640_v30, %v644_v31  ;;  %v4516_v42 = vcombine.low %v640_v30, %v644_v31  ;;  %v692_v30 = vld [vmem:[#allocation9 + $0x6a0] sm:$0xff] }
  0xbe   :  { %3799 = vmatprep.subr.bf16.mxu1 %v4487_v41  ;;  %v4519_v37 = vcombine.high %v641_v32, %v645_v33  ;;  %v653_v41 = vld [vmem:[#allocation9 + $0x568] sm:$0xff] }
  0xbf   :  { %v689_v31 = vld [vmem:[#allocation9 + $0x688] sm:$0xff] }
 0x14a   :  { %v257_v50 = vpop.f32.mrb[0].mxu0  ;;  %v5223_v56 = vpop.f32.mrb[0].mxu1 }
 0x14b   :  { %v456_v52 = vadd.f32 %v419_v48, %v257_v50  ;;  %v259_v53 = vpop.f32.mrb[1].mxu0  ;;  %v300_v60 = vpop.f32.mrb[1].mxu1  ;;  %v4518_v48 = vcombine.low %v641_v32, %v645_v33  ;;  %v693_v32 = vld [vmem:[#allocation9 + $0x6a8] sm:$0xff] }
 0x14c   :  { %v457_v54 = vadd.f32 %v423_v49, %v259_v53  ;;  %v261_v55 = vpop.f32.mrb[2].mxu0  ;;  %v459_v1 = vadd.f32 %v431_v51, %v300_v60  ;;  %v302_v2 = vpop.f32.mrb[2].mxu1  ;;  %v656_v51 = vld [vmem:[#allocation9 + $0x580] sm:$0xff]  ;;  %v657_v53 = vld [vmem:[#allocation9 + $0x588] sm:$0xff] }
 0x14d   :  { %v464_v57 = vmax.f32 %v456_v52, 0.0  ;;  %v262_v58 = vpop.f32.mrb[3].mxu0  ;;  %v303_v3 = vpop.f32.mrb[3].mxu1  ;;  %v660_v52 = vld [vmem:[#allocation9 + $0x5a0] sm:$0xff] }
 0x14e   :  { %v465_v61 = vmax.f32 %v457_v54, 0.0  ;;  %v467_v5 = vmax.f32 %v459_v1, 0.0  ;;  %v661_v54 = vld [vmem:[#allocation9 + $0x5a8] sm:$0xff]  ;;  %v4533_v58 = vcombine.high %v656_v51, %v660_v52  ;;  %v664_v60 = vld [vmem:[#allocation9 + $0x5c0] sm:$0xff]  ;;  %v4532_v1 = vcombine.low %v656_v51, %v660_v52 }
 0x14f   :  { %v5227_v6 = vpack.c.bf16 %v464_v57, %v464_v57  ;;  %v4535_v59 = vcombine.high %v657_v53, %v661_v54  ;;  %v4534_v2 = vcombine.low %v657_v53, %v661_v54  ;;  %v708_v51 = vld [vmem:[#allocation9 + $0x720] sm:$0xff]  ;;  %v705_v52 = vld [vmem:[#allocation9 + $0x708] sm:$0xff] }
 0x150   :  { %v5225_v4 = vpack.c.bf16 %v465_v61, %v465_v61  ;;  %v5231_v13 = vpack.c.bf16 %v467_v5, %v467_v5  ;;  %v4541_v5 = vcombine.high %v664_v60, %v668_v62  ;;  %v709_v53 = vld [vmem:[#allocation9 + $0x728] sm:$0xff] }
 0x152   :  { %3626 = vmatprep.mubr.bf16.mxu0 %v5225_v4  ;;  %3790 = vmatprep.mubr.bf16.mxu1 %v5225_v4  ;;  %v5233_v14 = vpop.f32.mrb[4].mxu0 }
 0x153   :  { %3627 = vmatmul.mubr.bf16.vlgmr.msra.gmra.mrb[8].mxu0 %v5227_v6  ;;  %3791 = vmatmul.mubr.bf16.vlgmr.msra.gmra.mrb[8].mxu1 %v5227_v6  ;;  %v5237_v15 = vpop.f32.mrb[5].mxu0  ;;  %v5241_v61 = vpop.f32.mrb[4].mxu1 }
 0x154   :  { %3636 = vmatpush1.bf16.msra.mxu0 %v4484_v39  ;;  %3800 = vmatpush1.bf16.msra.mxu1 %v4486_v40  ;;  %v343_v18 = vpop.f32.mrb[6].mxu0  ;;  %v652_v39 = vld [vmem:[#allocation9 + $0x560] sm:$0xff]  ;;  %v649_v40 = vld [vmem:[#allocation9 + $0x548] sm:$0xff]  ;;  %v5243_v3 = vpop.f32.mrb[5].mxu1 }
 0x155   :  { %3637 = vmatprep.subr.bf16.mxu0 %v4493_v7  ;;  %3801 = vmatprep.subr.bf16.mxu1 %v4495_v8  ;;  %v344_v22 = vpop.f32.mrb[7].mxu0  ;;  %v4525_v49 = vcombine.high %v648_v38, %v652_v39  ;;  %v4527_v50 = vcombine.high %v649_v40, %v653_v41  ;;  %v4524_v55 = vcombine.low %v648_v38, %v652_v39  ;;  %v672_v8 = vld [vmem:[#allocation9 + $0x600] sm:$0xff]  ;;  %v384_v9 = vpop.f32.mrb[6].mxu1  ;;  %v697_v39 = vld [vmem:[#allocation9 + $0x6c8] sm:$0xff] }
 0x156   :  { %3667 = vmatprep.mubr.bf16.mxu0 %v5231_v13  ;;  %3831 = vmatprep.mubr.bf16.mxu1 %v5231_v13  ;;  %v4526_v57 = vcombine.low %v649_v40, %v653_v41  ;;  %v4543_v7 = vcombine.high %v665_v63, %v669_v0  ;;  %v4542_v18 = vcombine.low %v665_v63, %v669_v0  ;;  %v684_v22 = vld [vmem:[#allocation9 + $0x660] sm:$0xff]  ;;  %v701_v40 = vld [vmem:[#allocation9 + $0x6e8] sm:$0xff]  ;;  %v5246_v0 = vsub.s32 2, %v5204_v43 }
 0x157   :  { %v4548_v25 = vcombine.low %v672_v8, %v676_v10  ;;  %v4556_v33 = vcombine.low %v680_v21, %v684_v22  ;;  %v700_v38 = vld [vmem:[#allocation9 + $0x6e0] sm:$0xff]  ;;  %v717_v63 = vld [vmem:[#allocation9 + $0x768] sm:$0xff] }
 0x158   :  { %3638 = vmatpush1.bf16.msra.mxu0 %v4492_v16  ;;  %3802 = vmatpush1.bf16.msra.mxu1 %v4494_v17  ;;  %v385_v16 = vpop.f32.mrb[7].mxu1  ;;  %v4540_v17 = vcombine.low %v664_v60, %v668_v62  ;;  %v716_v60 = vld [vmem:[#allocation9 + $0x760] sm:$0xff]  ;;  %v713_v62 = vld [vmem:[#allocation9 + $0x748] sm:$0xff] }
 0x159   :  { %3639 = vmatprep.subr.bf16.mxu0 %v4501_v19  ;;  %3803 = vmatprep.subr.bf16.mxu1 %v4503_v20  ;;  %v4549_v19 = vcombine.high %v672_v8, %v676_v10  ;;  %v4551_v20 = vcombine.high %v673_v11, %v677_v12  ;;  %v720_v8 = vld [vmem:[#allocation9 + $0x780] sm:$0xff]  ;;  %v721_v10 = vld [vmem:[#allocation9 + $0x788] sm:$0xff]  ;;  %v427_v16 = vrot.slane %v5209_v45, %v5246_v0 }
 0x15a   :  { %v724_v9 = vld [vmem:[#allocation9 + $0x7a0] sm:$0xff] }
 0x15c   :  { %3640 = vmatpush1.bf16.msra.mxu0 %v4500_v26  ;;  %3804 = vmatpush1.bf16.msra.mxu1 %v4502_v27  ;;  %v4550_v26 = vcombine.low %v673_v11, %v677_v12  ;;  %v4557_v27 = vcombine.high %v680_v21, %v684_v22  ;;  %v725_v11 = vld [vmem:[#allocation9 + $0x7a8] sm:$0xff]  ;;  %v5249_v12 = vsub.s32 5, %v5204_v43  ;;  %v728_v21 = vld [vmem:[#allocation9 + $0x7c0] sm:$0xff] }
 0x15d   :  { %3641 = vmatprep.subr.bf16.mxu0 %v4509_v28  ;;  %3805 = vmatprep.subr.bf16.mxu1 %v4511_v29  ;;  %v4559_v28 = vcombine.high %v681_v23, %v685_v24  ;;  %v688_v29 = vld [vmem:[#allocation9 + $0x680] sm:$0xff] }
 0x15e   :  { %v4564_v41 = vcombine.low %v688_v29, %v692_v30  ;;  %v732_v22 = vld [vmem:[#allocation9 + $0x7e0] sm:$0xff] }
 0x160   :  { %3642 = vmatpush1.bf16.msra.mxu0 %v4508_v34  ;;  %3806 = vmatpush1.bf16.msra.mxu1 %v4510_v35  ;;  %v4558_v34 = vcombine.low %v681_v23, %v685_v24  ;;  %v4565_v35 = vcombine.high %v688_v29, %v692_v30  ;;  %v729_v23 = vld [vmem:[#allocation9 + $0x7c8] sm:$0xff]  ;;  %v4605_v29 = vcombine.high %v728_v21, %v732_v22 }
 0x161   :  { %3643 = vmatprep.subr.bf16.mxu0 %v4517_v36  ;;  %3807 = vmatprep.subr.bf16.mxu1 %v4519_v37  ;;  %v4567_v36 = vcombine.high %v689_v31, %v693_v32  ;;  %v696_v37 = vld [vmem:[#allocation9 + $0x6c0] sm:$0xff]  ;;  %v733_v24 = vld [vmem:[#allocation9 + $0x7e8] sm:$0xff] }
 0x162   :  { %v4572_v54 = vcombine.low %v696_v37, %v700_v38  ;;  %v4607_v30 = vcombine.high %v729_v23, %v733_v24 }
 0x164   :  { %3644 = vmatpush1.bf16.msra.mxu0 %v4516_v42  ;;  %3808 = vmatpush1.bf16.msra.mxu1 %v4518_v48  ;;  %v4566_v42 = vcombine.low %v689_v31, %v693_v32  ;;  %v4573_v48 = vcombine.high %v696_v37, %v700_v38  ;;  %v736_v31 = vld [vmem:[#allocation9 + $0x800] sm:$0xff]  ;;  %v4604_v37 = vcombine.low %v728_v21, %v732_v22 }
 0x165   :  { %3645 = vmatprep.subr.bf16.mxu0 %v4525_v49  ;;  %3809 = vmatprep.subr.bf16.mxu1 %v4527_v50  ;;  %v4575_v49 = vcombine.high %v697_v39, %v701_v40  ;;  %v704_v50 = vld [vmem:[#allocation9 + $0x700] sm:$0xff]  ;;  %v4606_v38 = vcombine.low %v729_v23, %v733_v24 }
 0x166   :  { %v740_v32 = vld [vmem:[#allocation9 + $0x820] sm:$0xff] }
 0x168   :  { %3646 = vmatpush1.bf16.msra.mxu0 %v4524_v55  ;;  %3810 = vmatpush1.bf16.msra.mxu1 %v4526_v57  ;;  %v4574_v55 = vcombine.low %v697_v39, %v701_v40  ;;  %v4581_v57 = vcombine.high %v704_v50, %v708_v51  ;;  %v744_v40 = vld [vmem:[#allocation9 + $0x840] sm:$0xff] }
 0x169   :  { %3647 = vmatprep.subr.bf16.mxu0 %v4533_v58  ;;  %3811 = vmatprep.subr.bf16.mxu1 %v4535_v59  ;;  %v4583_v58 = vcombine.high %v705_v52, %v709_v53  ;;  %v712_v59 = vld [vmem:[#allocation9 + $0x740] sm:$0xff] }
 0x16c   :  { %3648 = vmatpush1.bf16.msra.mxu0 %v4532_v1  ;;  %3812 = vmatpush1.bf16.msra.mxu1 %v4534_v2  ;;  %v4580_v1 = vcombine.low %v704_v50, %v708_v51  ;;  %v4582_v2 = vcombine.low %v705_v52, %v709_v53  ;;  %v4612_v51 = vcombine.low %v736_v31, %v740_v32 }
 0x16d   :  { %3649 = vmatprep.subr.bf16.mxu0 %v4541_v5  ;;  %3813 = vmatprep.subr.bf16.mxu1 %v4543_v7  ;;  %v4589_v5 = vcombine.high %v712_v59, %v716_v60  ;;  %v4591_v7 = vcombine.high %v713_v62, %v717_v63 }
 0x170   :  { %3650 = vmatpush1.bf16.msra.mxu0 %v4540_v17  ;;  %3814 = vmatpush1.bf16.msra.mxu1 %v4542_v18  ;;  %v4588_v17 = vcombine.low %v712_v59, %v716_v60  ;;  %v4590_v18 = vcombine.low %v713_v62, %v717_v63 }
 0x171   :  { %3651 = vmatprep.subr.bf16.mxu0 %v4549_v19  ;;  %3815 = vmatprep.subr.bf16.mxu1 %v4551_v20  ;;  %v4597_v19 = vcombine.high %v720_v8, %v724_v9  ;;  %v4599_v20 = vcombine.high %v721_v10, %v725_v11 }
 0x174   :  { %3652 = vmatpush1.bf16.msra.mxu0 %v4548_v25  ;;  %3816 = vmatpush1.bf16.msra.mxu1 %v4550_v26  ;;  %v439_v25 = vrot.slane %v5209_v45, %v5249_v12  ;;  %v458_v26 = vadd.f32 %v427_v16, %v5223_v56  ;;  %v4613_v56 = vcombine.high %v736_v31, %v740_v32 }
 0x175   :  { %3653 = vmatprep.subr.bf16.mxu0 %v4557_v27  ;;  %3817 = vmatprep.subr.bf16.mxu1 %v4559_v28  ;;  %v4596_v27 = vcombine.low %v720_v8, %v724_v9  ;;  %v4598_v28 = vcombine.low %v721_v10, %v725_v11  ;;  %v765_v8 = vld [vmem:[#allocation9 + $0x8e8] sm:$0xff] }
 0x178   :  { %3654 = vmatpush1.bf16.msra.mxu0 %v4556_v33  ;;  %3818 = vmatpush1.bf16.msra.mxu1 %v4558_v34  ;;  %v737_v33 = vld [vmem:[#allocation9 + $0x808] sm:$0xff] }
 0x179   :  { %3655 = vmatprep.subr.bf16.mxu0 %v4565_v35  ;;  %3819 = vmatprep.subr.bf16.mxu1 %v4567_v36  ;;  %v741_v34 = vld [vmem:[#allocation9 + $0x828] sm:$0xff]  ;;  %v461_v35 = vadd.f32 %v439_v25, %v5237_v15  ;;  %v466_v36 = vmax.f32 %v458_v26, 0.0  ;;  %v776_v25 = vld [vmem:[#allocation9 + $0x940] sm:$0xff] }
 0x17a   :  { %v4615_v39 = vcombine.high %v737_v33, %v741_v34  ;;  %v4614_v15 = vcombine.low %v737_v33, %v741_v34  ;;  %v780_v26 = vld [vmem:[#allocation9 + $0x960] sm:$0xff] }
 0x17b   :  { %v5257_v50 = vpack.c.bf16 %v466_v36, %v466_v36  ;;  %v4653_v31 = vcombine.high %v776_v25, %v780_v26  ;;  %v784_v33 = vld [vmem:[#allocation9 + $0x980] sm:$0xff]  ;;  %v789_v36 = vld [vmem:[#allocation9 + $0x9a8] sm:$0xff] }
 0x17c   :  { %3656 = vmatpush1.bf16.msra.mxu0 %v4564_v41  ;;  %3820 = vmatpush1.bf16.msra.mxu1 %v4566_v42  ;;  %v748_v41 = vld [vmem:[#allocation9 + $0x860] sm:$0xff]  ;;  %v745_v42 = vld [vmem:[#allocation9 + $0x848] sm:$0xff] }
 0x17d   :  { %3657 = vmatprep.subr.bf16.mxu0 %v4573_v48  ;;  %3821 = vmatprep.subr.bf16.mxu1 %v4575_v49  ;;  %v749_v48 = vld [vmem:[#allocation9 + $0x868] sm:$0xff]  ;;  %v469_v49 = vmax.f32 %v461_v35, 0.0  ;;  %v4621_v52 = vcombine.high %v744_v40, %v748_v41  ;;  %v4620_v60 = vcombine.low %v744_v40, %v748_v41  ;;  %v788_v34 = vld [vmem:[#allocation9 + $0x9a0] sm:$0xff] }
 0x17e   :  { %v4623_v53 = vcombine.high %v745_v42, %v749_v48  ;;  %v4622_v62 = vcombine.low %v745_v42, %v749_v48  ;;  %v785_v35 = vld [vmem:[#allocation9 + $0x988] sm:$0xff]  ;;  %v792_v40 = vld [vmem:[#allocation9 + $0x9c0] sm:$0xff] }
 0x17f   :  { %v5259_v59 = vpack.c.bf16 %v469_v49, %v469_v49  ;;  %v796_v41 = vld [vmem:[#allocation9 + $0x9e0] sm:$0xff]  ;;  %v793_v42 = vld [vmem:[#allocation9 + $0x9c8] sm:$0xff]  ;;  %v4660_v49 = vcombine.low %v784_v33, %v788_v34 }
 0x180   :  { %3658 = vmatpush1.bf16.msra.mxu0 %v4572_v54  ;;  %3822 = vmatpush1.bf16.msra.mxu1 %v4574_v55  ;;  %v752_v54 = vld [vmem:[#allocation9 + $0x880] sm:$0xff]  ;;  %v797_v48 = vld [vmem:[#allocation9 + $0x9e8] sm:$0xff] }
 0x181   :  { %3659 = vmatprep.subr.bf16.mxu0 %v4581_v57  ;;  %3823 = vmatprep.subr.bf16.mxu1 %v4583_v58  ;;  %v756_v55 = vld [vmem:[#allocation9 + $0x8a0] sm:$0xff]  ;;  %v753_v57 = vld [vmem:[#allocation9 + $0x888] sm:$0xff] }
 0x182   :  { %v757_v58 = vld [vmem:[#allocation9 + $0x8a8] sm:$0xff]  ;;  %v4629_v63 = vcombine.high %v752_v54, %v756_v55  ;;  %v4628_v9 = vcombine.low %v752_v54, %v756_v55  ;;  %v804_v54 = vld [vmem:[#allocation9 + $0xa20] sm:$0xff] }
 0x183   :  { %v4630_v10 = vcombine.low %v753_v57, %v757_v58  ;;  %v801_v55 = vld [vmem:[#allocation9 + $0xa08] sm:$0xff] }
 0x184   :  { %3660 = vmatpush1.bf16.msra.mxu0 %v4580_v1  ;;  %3824 = vmatpush1.bf16.msra.mxu1 %v4582_v2  ;;  %v4631_v1 = vcombine.high %v753_v57, %v757_v58  ;;  %v760_v2 = vld [vmem:[#allocation9 + $0x8c0] sm:$0xff]  ;;  %v805_v57 = vld [vmem:[#allocation9 + $0xa28] sm:$0xff]  ;;  %v4668_v58 = vcombine.low %v792_v40, %v796_v41 }
 0x185   :  { %3661 = vmatprep.subr.bf16.mxu0 %v4589_v5  ;;  %3825 = vmatprep.subr.bf16.mxu1 %v4591_v7  ;;  %v764_v5 = vld [vmem:[#allocation9 + $0x8e0] sm:$0xff]  ;;  %v761_v7 = vld [vmem:[#allocation9 + $0x8c8] sm:$0xff] }
 0x186   :  { %v4637_v11 = vcombine.high %v760_v2, %v764_v5  ;;  %v4639_v16 = vcombine.high %v761_v7, %v765_v8  ;;  %v4636_v21 = vcombine.low %v760_v2, %v764_v5  ;;  %v4638_v22 = vcombine.low %v761_v7, %v765_v8  ;;  %v812_v2 = vld [vmem:[#allocation9 + $0xa60] sm:$0xff]  ;;  %v809_v5 = vld [vmem:[#allocation9 + $0xa48] sm:$0xff] }
 0x187   :  { %v813_v7 = vld [vmem:[#allocation9 + $0xa68] sm:$0xff] }
 0x188   :  { %3662 = vmatpush1.bf16.msra.mxu0 %v4588_v17  ;;  %3826 = vmatpush1.bf16.msra.mxu1 %v4590_v18  ;;  %v768_v17 = vld [vmem:[#allocation9 + $0x900] sm:$0xff] }
 0x189   :  { %3663 = vmatprep.subr.bf16.mxu0 %v4597_v19  ;;  %3827 = vmatprep.subr.bf16.mxu1 %v4599_v20  ;;  %v772_v18 = vld [vmem:[#allocation9 + $0x920] sm:$0xff]  ;;  %v769_v19 = vld [vmem:[#allocation9 + $0x908] sm:$0xff] }
 0x18a   :  { %v773_v20 = vld [vmem:[#allocation9 + $0x928] sm:$0xff]  ;;  %v4645_v23 = vcombine.high %v768_v17, %v772_v18 }
 0x18b   :  { %v4647_v24 = vcombine.high %v769_v19, %v773_v20 }
 0x18c   :  { %3664 = vmatpush1.bf16.msra.mxu0 %v4596_v27  ;;  %3828 = vmatpush1.bf16.msra.mxu1 %v4598_v28  ;;  %v777_v27 = vld [vmem:[#allocation9 + $0x948] sm:$0xff] }
 0x18d   :  { %3665 = vmatprep.subr.bf16.mxu0 %v4605_v29  ;;  %3829 = vmatprep.subr.bf16.mxu1 %v4607_v30  ;;  %v781_v28 = vld [vmem:[#allocation9 + $0x968] sm:$0xff]  ;;  %v4644_v29 = vcombine.low %v768_v17, %v772_v18  ;;  %v4646_v30 = vcombine.low %v769_v19, %v773_v20  ;;  %v820_v17 = vld [vmem:[#allocation9 + $0xaa0] sm:$0xff] }
 0x18e   :  { %v4655_v32 = vcombine.high %v777_v27, %v781_v28  ;;  %v817_v18 = vld [vmem:[#allocation9 + $0xa88] sm:$0xff] }
 0x18f   :  { %v821_v19 = vld [vmem:[#allocation9 + $0xaa8] sm:$0xff] }
 0x190   :  { %3666 = vmatpush1.bf16.msra.mxu0 %v4604_v37  ;;  %3830 = vmatpush1.bf16.msra.mxu1 %v4606_v38  ;;  %v4652_v37 = vcombine.low %v776_v25, %v780_v26  ;;  %v4654_v38 = vcombine.low %v777_v27, %v781_v28  ;;  %v828_v25 = vld [vmem:[#allocation9 + $0xae0] sm:$0xff]  ;;  %v825_v26 = vld [vmem:[#allocation9 + $0xac8] sm:$0xff] }
 0x191   :  { %3676 = vmatprep.subr.bf16.mxu0 %v4613_v56  ;;  %3840 = vmatprep.subr.bf16.mxu1 %v4615_v39  ;;  %v4661_v56 = vcombine.high %v784_v33, %v788_v34  ;;  %v4663_v39 = vcombine.high %v785_v35, %v789_v36  ;;  %v829_v27 = vld [vmem:[#allocation9 + $0xae8] sm:$0xff]  ;;  %v836_v33 = vld [vmem:[#allocation9 + $0xb20] sm:$0xff] }
 0x192   :  { %v833_v34 = vld [vmem:[#allocation9 + $0xb08] sm:$0xff] }
 0x193   :  { %3668 = vmatmul.mubr.bf16.vlgmr.msra.gmra.mrb[8].mxu0 %v5257_v50  ;;  %3832 = vmatmul.mubr.bf16.vlgmr.msra.gmra.mrb[8].mxu1 %v5257_v50 }
 0x194   :  { %3677 = vmatpush1.bf16.msra.mxu0 %v4612_v51  ;;  %3841 = vmatpush1.bf16.msra.mxu1 %v4614_v15  ;;  %v4662_v51 = vcombine.low %v785_v35, %v789_v36  ;;  %v4669_v15 = vcombine.high %v792_v40, %v796_v41  ;;  %v837_v35 = vld [vmem:[#allocation9 + $0xb28] sm:$0xff]  ;;  %v844_v40 = vld [vmem:[#allocation9 + $0xb60] sm:$0xff] }
 0x195   :  { %3678 = vmatprep.subr.bf16.mxu0 %v4621_v52  ;;  %3842 = vmatprep.subr.bf16.mxu1 %v4623_v53  ;;  %v4671_v52 = vcombine.high %v793_v42, %v797_v48  ;;  %v800_v53 = vld [vmem:[#allocation9 + $0xa00] sm:$0xff]  ;;  %v841_v41 = vld [vmem:[#allocation9 + $0xb48] sm:$0xff] }
 0x196   :  { %3708 = vmatprep.mubr.bf16.mxu0 %v5259_v59  ;;  %3872 = vmatprep.mubr.bf16.mxu1 %v5259_v59  ;;  %v4676_v8 = vcombine.low %v800_v53, %v804_v54 }
 0x198   :  { %3679 = vmatpush1.bf16.msra.mxu0 %v4620_v60  ;;  %3843 = vmatpush1.bf16.msra.mxu1 %v4622_v62  ;;  %v4670_v60 = vcombine.low %v793_v42, %v797_v48  ;;  %v4677_v62 = vcombine.high %v800_v53, %v804_v54  ;;  %v845_v42 = vld [vmem:[#allocation9 + $0xb68] sm:$0xff]  ;;  %v5266_v48 = vsub.s32 4, %v5204_v43  ;;  %v848_v53 = vld [vmem:[#allocation9 + $0xb80] sm:$0xff] }
 0x199   :  { %3680 = vmatprep.subr.bf16.mxu0 %v4629_v63  ;;  %3844 = vmatprep.subr.bf16.mxu1 %v4631_v1  ;;  %v4679_v63 = vcombine.high %v801_v55, %v805_v57  ;;  %v808_v1 = vld [vmem:[#allocation9 + $0xa40] sm:$0xff] }
 0x19a   :  { %v4684_v20 = vcombine.low %v808_v1, %v812_v2  ;;  %v852_v54 = vld [vmem:[#allocation9 + $0xba0] sm:$0xff] }
 0x19c   :  { %3681 = vmatpush1.bf16.msra.mxu0 %v4628_v9  ;;  %3845 = vmatpush1.bf16.msra.mxu1 %v4630_v10  ;;  %v4678_v9 = vcombine.low %v801_v55, %v805_v57  ;;  %v4685_v10 = vcombine.high %v808_v1, %v812_v2  ;;  %v849_v55 = vld [vmem:[#allocation9 + $0xb88] sm:$0xff]  ;;  %v4725_v1 = vcombine.high %v848_v53, %v852_v54 }
 0x19d   :  { %3682 = vmatprep.subr.bf16.mxu0 %v4637_v11  ;;  %3846 = vmatprep.subr.bf16.mxu1 %v4639_v16  ;;  %v4687_v11 = vcombine.high %v809_v5, %v813_v7  ;;  %v816_v16 = vld [vmem:[#allocation9 + $0xa80] sm:$0xff]  ;;  %v853_v57 = vld [vmem:[#allocation9 + $0xba8] sm:$0xff] }
 0x19e   :  { %v4692_v28 = vcombine.low %v816_v16, %v820_v17  ;;  %v4727_v2 = vcombine.high %v849_v55, %v853_v57 }
 0x1a0   :  { %3683 = vmatpush1.bf16.msra.mxu0 %v4636_v21  ;;  %3847 = vmatpush1.bf16.msra.mxu1 %v4638_v22  ;;  %v4686_v21 = vcombine.low %v809_v5, %v813_v7  ;;  %v4693_v22 = vcombine.high %v816_v16, %v820_v17  ;;  %v856_v5 = vld [vmem:[#allocation9 + $0xbc0] sm:$0xff]  ;;  %v4724_v16 = vcombine.low %v848_v53, %v852_v54  ;;  %v889_v53 = vld [vmem:[#allocation9 + $0xcc8] sm:$0xff] }
 0x1a1   :  { %3684 = vmatprep.subr.bf16.mxu0 %v4645_v23  ;;  %3848 = vmatprep.subr.bf16.mxu1 %v4647_v24  ;;  %v4695_v23 = vcombine.high %v817_v18, %v821_v19  ;;  %v824_v24 = vld [vmem:[#allocation9 + $0xac0] sm:$0xff]  ;;  %v4726_v17 = vcombine.low %v849_v55, %v853_v57  ;;  %v893_v54 = vld [vmem:[#allocation9 + $0xce8] sm:$0xff] }
 0x1a2   :  { %v4700_v36 = vcombine.low %v824_v24, %v828_v25  ;;  %v860_v7 = vld [vmem:[#allocation9 + $0xbe0] sm:$0xff] }
 0x1a4   :  { %3685 = vmatpush1.bf16.msra.mxu0 %v4644_v29  ;;  %3849 = vmatpush1.bf16.msra.mxu1 %v4646_v30  ;;  %v4694_v29 = vcombine.low %v817_v18, %v821_v19  ;;  %v4701_v30 = vcombine.high %v824_v24, %v828_v25  ;;  %v4733_v18 = vcombine.high %v856_v5, %v860_v7 }
 0x1a5   :  { %3686 = vmatprep.subr.bf16.mxu0 %v4653_v31  ;;  %3850 = vmatprep.subr.bf16.mxu1 %v4655_v32  ;;  %v4703_v31 = vcombine.high %v825_v26, %v829_v27  ;;  %v832_v32 = vld [vmem:[#allocation9 + $0xb00] sm:$0xff] }
 0x1a8   :  { %3687 = vmatpush1.bf16.msra.mxu0 %v4652_v37  ;;  %3851 = vmatpush1.bf16.msra.mxu1 %v4654_v38  ;;  %v4702_v37 = vcombine.low %v825_v26, %v829_v27  ;;  %v4709_v38 = vcombine.high %v832_v32, %v836_v33 }
 0x1a9   :  { %3688 = vmatprep.subr.bf16.mxu0 %v4661_v56  ;;  %3852 = vmatprep.subr.bf16.mxu1 %v4663_v39  ;;  %v4711_v56 = vcombine.high %v833_v34, %v837_v35  ;;  %v840_v39 = vld [vmem:[#allocation9 + $0xb40] sm:$0xff] }
 0x1ac   :  { %3689 = vmatpush1.bf16.msra.mxu0 %v4660_v49  ;;  %3853 = vmatpush1.bf16.msra.mxu1 %v4662_v51  ;;  %v4708_v49 = vcombine.low %v832_v32, %v836_v33  ;;  %v4710_v51 = vcombine.low %v833_v34, %v837_v35 }
 0x1ad   :  { %3690 = vmatprep.subr.bf16.mxu0 %v4669_v15  ;;  %3854 = vmatprep.subr.bf16.mxu1 %v4671_v52  ;;  %v4717_v15 = vcombine.high %v840_v39, %v844_v40  ;;  %v4719_v52 = vcombine.high %v841_v41, %v845_v42 }
 0x1b0   :  { %3691 = vmatpush1.bf16.msra.mxu0 %v4668_v58  ;;  %3855 = vmatpush1.bf16.msra.mxu1 %v4670_v60  ;;  %v5269_v58 = vsub.s32 7, %v5204_v43  ;;  %v435_v60 = vrot.slane %v5209_v45, %v5266_v48 }
 0x1b1   :  { %3692 = vmatprep.subr.bf16.mxu0 %v4677_v62  ;;  %3856 = vmatprep.subr.bf16.mxu1 %v4679_v63  ;;  %v4716_v62 = vcombine.low %v840_v39, %v844_v40  ;;  %v4718_v63 = vcombine.low %v841_v41, %v845_v42  ;;  %v885_v39 = vld [vmem:[#allocation9 + $0xca8] sm:$0xff] }
 0x1b4   :  { %3693 = vmatpush1.bf16.msra.mxu0 %v4676_v8  ;;  %3857 = vmatpush1.bf16.msra.mxu1 %v4678_v9  ;;  %v857_v8 = vld [vmem:[#allocation9 + $0xbc8] sm:$0xff] }
 0x1b5   :  { %3694 = vmatprep.subr.bf16.mxu0 %v4685_v10  ;;  %3858 = vmatprep.subr.bf16.mxu1 %v4687_v11  ;;  %v861_v9 = vld [vmem:[#allocation9 + $0xbe8] sm:$0xff]  ;;  %v447_v10 = vrot.slane %v5209_v45, %v5269_v58  ;;  %v460_v11 = vadd.f32 %v435_v60, %v5233_v14  ;;  %v4732_v45 = vcombine.low %v856_v5, %v860_v7 }
 0x1b6   :  { %v4735_v19 = vcombine.high %v857_v8, %v861_v9  ;;  %v4734_v26 = vcombine.low %v857_v8, %v861_v9  ;;  %v901_v5 = vld [vmem:[#allocation9 + $0xd28] sm:$0xff]  ;;  %v4766_v8 = vcombine.low %v889_v53, %v893_v54 }
 0x1b7   :  { %v463_v24 = vadd.f32 %v447_v10, %v5243_v3  ;;  %v468_v25 = vmax.f32 %v460_v11, 0.0  ;;  %v904_v11 = vld [vmem:[#allocation9 + $0xd40] sm:$0xff] }
 0x1b8   :  { %3695 = vmatpush1.bf16.msra.mxu0 %v4684_v20  ;;  %3859 = vmatpush1.bf16.msra.mxu1 %v4686_v21  ;;  %v864_v20 = vld [vmem:[#allocation9 + $0xc00] sm:$0xff] }
 0x1b9   :  { %3696 = vmatprep.subr.bf16.mxu0 %v4693_v22  ;;  %3860 = vmatprep.subr.bf16.mxu1 %v4695_v23  ;;  %v868_v21 = vld [vmem:[#allocation9 + $0xc20] sm:$0xff]  ;;  %v865_v22 = vld [vmem:[#allocation9 + $0xc08] sm:$0xff]  ;;  %v471_v32 = vmax.f32 %v463_v24, 0.0  ;;  %v5277_v33 = vpack.c.bf16 %v468_v25, %v468_v25 }
 0x1ba   :  { %v869_v23 = vld [vmem:[#allocation9 + $0xc28] sm:$0xff]  ;;  %v4741_v14 = vcombine.high %v864_v20, %v868_v21  ;;  %v4740_v34 = vcombine.low %v864_v20, %v868_v21  ;;  %v916_v24 = vld [vmem:[#allocation9 + $0xda0] sm:$0xff] }
 0x1bb   :  { %v4743_v27 = vcombine.high %v865_v22, %v869_v23  ;;  %v4742_v3 = vcombine.low %v865_v22, %v869_v23  ;;  %v5279_v40 = vpack.c.bf16 %v471_v32, %v471_v32  ;;  %v912_v23 = vld [vmem:[#allocation9 + $0xd80] sm:$0xff]  ;;  %v913_v25 = vld [vmem:[#allocation9 + $0xd88] sm:$0xff] }
 0x1bc   :  { %3697 = vmatpush1.bf16.msra.mxu0 %v4692_v28  ;;  %3861 = vmatpush1.bf16.msra.mxu1 %v4694_v29  ;;  %v872_v28 = vld [vmem:[#allocation9 + $0xc40] sm:$0xff]  ;;  %v925_v32 = vld [vmem:[#allocation9 + $0xde8] sm:$0xff] }
 0x1bd   :  { %3698 = vmatprep.subr.bf16.mxu0 %v4701_v30  ;;  %3862 = vmatprep.subr.bf16.mxu1 %v4703_v31  ;;  %v876_v29 = vld [vmem:[#allocation9 + $0xc60] sm:$0xff]  ;;  %v873_v30 = vld [vmem:[#allocation9 + $0xc48] sm:$0xff] }
 0x1be   :  { %v877_v31 = vld [vmem:[#allocation9 + $0xc68] sm:$0xff]  ;;  %v4749_v35 = vcombine.high %v872_v28, %v876_v29  ;;  %v4748_v41 = vcombine.low %v872_v28, %v876_v29  ;;  %v920_v29 = vld [vmem:[#allocation9 + $0xdc0] sm:$0xff] }
 0x1bf   :  { %v4750_v42 = vcombine.low %v873_v30, %v877_v31 }
 0x1c0   :  { %3699 = vmatpush1.bf16.msra.mxu0 %v4700_v36  ;;  %3863 = vmatpush1.bf16.msra.mxu1 %v4702_v37  ;;  %v4751_v36 = vcombine.high %v873_v30, %v877_v31  ;;  %v880_v37 = vld [vmem:[#allocation9 + $0xc80] sm:$0xff]  ;;  %v921_v31 = vld [vmem:[#allocation9 + $0xdc8] sm:$0xff] }
 0x1c1   :  { %3700 = vmatprep.subr.bf16.mxu0 %v4709_v38  ;;  %3864 = vmatprep.subr.bf16.mxu1 %v4711_v56  ;;  %v884_v38 = vld [vmem:[#allocation9 + $0xca0] sm:$0xff]  ;;  %v881_v56 = vld [vmem:[#allocation9 + $0xc88] sm:$0xff] }
 0x1c2   :  { %v4756_v55 = vcombine.low %v880_v37, %v884_v38  ;;  %v4758_v57 = vcombine.low %v881_v56, %v885_v39  ;;  %v924_v30 = vld [vmem:[#allocation9 + $0xde0] sm:$0xff] }
 0x1c4   :  { %3701 = vmatpush1.bf16.msra.mxu0 %v4708_v49  ;;  %3865 = vmatpush1.bf16.msra.mxu1 %v4710_v51  ;;  %v4757_v49 = vcombine.high %v880_v37, %v884_v38  ;;  %v4759_v51 = vcombine.high %v881_v56, %v885_v39  ;;  %v928_v37 = vld [vmem:[#allocation9 + $0xe00] sm:$0xff]  ;;  %v929_v56 = vld [vmem:[#allocation9 + $0xe08] sm:$0xff] }
 0x1c5   :  { %3702 = vmatprep.subr.bf16.mxu0 %v4717_v15  ;;  %3866 = vmatprep.subr.bf16.mxu1 %v4719_v52  ;;  %v888_v15 = vld [vmem:[#allocation9 + $0xcc0] sm:$0xff]  ;;  %v933_v39 = vld [vmem:[#allocation9 + $0xe28] sm:$0xff] }
 0x1c6   :  { %v892_v52 = vld [vmem:[#allocation9 + $0xce0] sm:$0xff] }
 0x1c7   :  { %v4765_v60 = vcombine.high %v888_v15, %v892_v52  ;;  %v4764_v7 = vcombine.low %v888_v15, %v892_v52  ;;  %v932_v38 = vld [vmem:[#allocation9 + $0xe20] sm:$0xff] }
 0x1c8   :  { %3703 = vmatpush1.bf16.msra.mxu0 %v4716_v62  ;;  %3867 = vmatpush1.bf16.msra.mxu1 %v4718_v63  ;;  %v4767_v62 = vcombine.high %v889_v53, %v893_v54  ;;  %v896_v63 = vld [vmem:[#allocation9 + $0xd00] sm:$0xff]  ;;  %v937_v53 = vld [vmem:[#allocation9 + $0xe48] sm:$0xff] }
 0x1c9   :  { %3704 = vmatprep.subr.bf16.mxu0 %v4725_v1  ;;  %3868 = vmatprep.subr.bf16.mxu1 %v4727_v2  ;;  %v900_v1 = vld [vmem:[#allocation9 + $0xd20] sm:$0xff]  ;;  %v897_v2 = vld [vmem:[#allocation9 + $0xd08] sm:$0xff] }
 0x1ca   :  { %v4773_v9 = vcombine.high %v896_v63, %v900_v1  ;;  %v4775_v10 = vcombine.high %v897_v2, %v901_v5  ;;  %v4774_v20 = vcombine.low %v897_v2, %v901_v5  ;;  %v936_v15 = vld [vmem:[#allocation9 + $0xe40] sm:$0xff]  ;;  %v941_v54 = vld [vmem:[#allocation9 + $0xe68] sm:$0xff] }
 0x1cb   :  { %v940_v52 = vld [vmem:[#allocation9 + $0xe60] sm:$0xff]  ;;  %v945_v2 = vld [vmem:[#allocation9 + $0xe88] sm:$0xff] }
 0x1cc   :  { %3705 = vmatpush1.bf16.msra.mxu0 %v4724_v16  ;;  %3869 = vmatpush1.bf16.msra.mxu1 %v4726_v17  ;;  %v908_v16 = vld [vmem:[#allocation9 + $0xd60] sm:$0xff]  ;;  %v905_v17 = vld [vmem:[#allocation9 + $0xd48] sm:$0xff] }
 0x1cd   :  { %3706 = vmatprep.subr.bf16.mxu0 %v4733_v18  ;;  %3870 = vmatprep.subr.bf16.mxu1 %v4735_v19  ;;  %v909_v18 = vld [vmem:[#allocation9 + $0xd68] sm:$0xff]  ;;  %v4772_v19 = vcombine.low %v896_v63, %v900_v1  ;;  %v4781_v21 = vcombine.high %v904_v11, %v908_v16  ;;  %v944_v63 = vld [vmem:[#allocation9 + $0xe80] sm:$0xff] }
 0x1ce   :  { %v4783_v22 = vcombine.high %v905_v17, %v909_v18  ;;  %v948_v1 = vld [vmem:[#allocation9 + $0xea0] sm:$0xff]  ;;  %v949_v5 = vld [vmem:[#allocation9 + $0xea8] sm:$0xff] }
 0x1d0   :  { %3707 = vmatpush1.bf16.msra.mxu0 %v4732_v45  ;;  %3871 = vmatpush1.bf16.msra.mxu1 %v4734_v26  ;;  %v917_v45 = vld [vmem:[#allocation9 + $0xda8] sm:$0xff]  ;;  %v4780_v26 = vcombine.low %v904_v11, %v908_v16  ;;  %v952_v11 = vld [vmem:[#allocation9 + $0xec0] sm:$0xff] }
 0x1d1   :  { %3717 = vmatprep.subr.bf16.mxu0 %v4741_v14  ;;  %3881 = vmatprep.subr.bf16.mxu1 %v4743_v27  ;;  %v4782_v14 = vcombine.low %v905_v17, %v909_v18  ;;  %v4789_v27 = vcombine.high %v912_v23, %v916_v24  ;;  %v4791_v28 = vcombine.high %v913_v25, %v917_v45  ;;  %v956_v16 = vld [vmem:[#allocation9 + $0xee0] sm:$0xff]  ;;  %v953_v17 = vld [vmem:[#allocation9 + $0xec8] sm:$0xff] }
 0x1d2   :  { %v957_v18 = vld [vmem:[#allocation9 + $0xee8] sm:$0xff] }
 0x1d3   :  { %3709 = vmatmul.mubr.bf16.vlgmr.msra.gmra.mrb[8].mxu0 %v5277_v33  ;;  %3873 = vmatmul.mubr.bf16.vlgmr.msra.gmra.mrb[8].mxu1 %v5277_v33 }
 0x1d4   :  { %3718 = vmatpush1.bf16.msra.mxu0 %v4740_v34  ;;  %3882 = vmatpush1.bf16.msra.mxu1 %v4742_v3  ;;  %v4788_v34 = vcombine.low %v912_v23, %v916_v24  ;;  %v4790_v3 = vcombine.low %v913_v25, %v917_v45  ;;  %v960_v23 = vld [vmem:[#allocation9 + $0xf00] sm:$0xff]  ;;  %v961_v25 = vld [vmem:[#allocation9 + $0xf08] sm:$0xff] }
 0x1d5   :  { %3719 = vmatprep.subr.bf16.mxu0 %v4749_v35  ;;  %3883 = vmatprep.subr.bf16.mxu1 %v4751_v36  ;;  %v4797_v35 = vcombine.high %v920_v29, %v924_v30  ;;  %v4799_v36 = vcombine.high %v921_v31, %v925_v32  ;;  %v964_v24 = vld [vmem:[#allocation9 + $0xf20] sm:$0xff]  ;;  %v965_v45 = vld [vmem:[#allocation9 + $0xf28] sm:$0xff] }
 0x1d6   :  { %3749 = vmatprep.mubr.bf16.mxu0 %v5279_v40  ;;  %3913 = vmatprep.mubr.bf16.mxu1 %v5279_v40 }
 0x1d8   :  { %3720 = vmatpush1.bf16.msra.mxu0 %v4748_v41  ;;  %3884 = vmatpush1.bf16.msra.mxu1 %v4750_v42  ;;  %v4796_v41 = vcombine.low %v920_v29, %v924_v30  ;;  %v4798_v42 = vcombine.low %v921_v31, %v925_v32  ;;  %v968_v29 = vld [vmem:[#allocation9 + $0xf40] sm:$0xff]  ;;  %v969_v31 = vld [vmem:[#allocation9 + $0xf48] sm:$0xff] }
 0x1d9   :  { %3721 = vmatprep.subr.bf16.mxu0 %v4757_v49  ;;  %3885 = vmatprep.subr.bf16.mxu1 %v4759_v51  ;;  %v4805_v49 = vcombine.high %v928_v37, %v932_v38  ;;  %v4807_v51 = vcombine.high %v929_v56, %v933_v39  ;;  %v972_v30 = vld [vmem:[#allocation9 + $0xf60] sm:$0xff]  ;;  %v973_v32 = vld [vmem:[#allocation9 + $0xf68] sm:$0xff] }
 0x1dc   :  { %3722 = vmatpush1.bf16.msra.mxu0 %v4756_v55  ;;  %3886 = vmatpush1.bf16.msra.mxu1 %v4758_v57  ;;  %v4804_v55 = vcombine.low %v928_v37, %v932_v38  ;;  %v4806_v57 = vcombine.low %v929_v56, %v933_v39  ;;  %v4847_v37 = vcombine.high %v969_v31, %v973_v32  ;;  %v976_v38 = vld [vmem:[#allocation9 + $0xf80] sm:$0xff]  ;;  %v977_v39 = vld [vmem:[#allocation9 + $0xf88] sm:$0xff] }
 0x1dd   :  { %3723 = vmatprep.subr.bf16.mxu0 %v4765_v60  ;;  %3887 = vmatprep.subr.bf16.mxu1 %v4767_v62  ;;  %v4813_v60 = vcombine.high %v936_v15, %v940_v52  ;;  %v4815_v62 = vcombine.high %v937_v53, %v941_v54  ;;  %v980_v56 = vld [vmem:[#allocation9 + $0xfa0] sm:$0xff] }
 0x1e0   :  { %3724 = vmatpush1.bf16.msra.mxu0 %v4764_v7  ;;  %3888 = vmatpush1.bf16.msra.mxu1 %v4766_v8  ;;  %v4812_v7 = vcombine.low %v936_v15, %v940_v52  ;;  %v4814_v8 = vcombine.low %v937_v53, %v941_v54  ;;  %v4853_v52 = vcombine.high %v976_v38, %v980_v56  ;;  %v984_v53 = vld [vmem:[#allocation9 + $0xfc0] sm:$0xff] }
 0x1e1   :  { %3725 = vmatprep.subr.bf16.mxu0 %v4773_v9  ;;  %3889 = vmatprep.subr.bf16.mxu1 %v4775_v10  ;;  %v4821_v9 = vcombine.high %v944_v63, %v948_v1  ;;  %v4823_v10 = vcombine.high %v945_v2, %v949_v5  ;;  %v988_v54 = vld [vmem:[#allocation9 + $0xfe0] sm:$0xff] }
 0x1e4   :  { %3726 = vmatpush1.bf16.msra.mxu0 %v4772_v19  ;;  %3890 = vmatpush1.bf16.msra.mxu1 %v4774_v20  ;;  %v4820_v19 = vcombine.low %v944_v63, %v948_v1  ;;  %v4822_v20 = vcombine.low %v945_v2, %v949_v5  ;;  %v4861_v1 = vcombine.high %v984_v53, %v988_v54  ;;  %v482_v5 = vld [vmem:[#allocation9 + $0x10] sm:$0xff] }
 0x1e5   :  { %3727 = vmatprep.subr.bf16.mxu0 %v4781_v21  ;;  %3891 = vmatprep.subr.bf16.mxu1 %v4783_v22  ;;  %v4829_v21 = vcombine.high %v952_v11, %v956_v16  ;;  %v4831_v22 = vcombine.high %v953_v17, %v957_v18 }
 0x1e8   :  { %3728 = vmatpush1.bf16.msra.mxu0 %v4780_v26  ;;  %3892 = vmatpush1.bf16.msra.mxu1 %v4782_v14  ;;  %v4828_v26 = vcombine.low %v952_v11, %v956_v16  ;;  %v4830_v14 = vcombine.low %v953_v17, %v957_v18 }
 0x1e9   :  { %3729 = vmatprep.subr.bf16.mxu0 %v4789_v27  ;;  %3893 = vmatprep.subr.bf16.mxu1 %v4791_v28  ;;  %v4837_v27 = vcombine.high %v960_v23, %v964_v24  ;;  %v4839_v28 = vcombine.high %v961_v25, %v965_v45 }
 0x1ec   :  { %3730 = vmatpush1.bf16.msra.mxu0 %v4788_v34  ;;  %3894 = vmatpush1.bf16.msra.mxu1 %v4790_v3  ;;  %v4836_v34 = vcombine.low %v960_v23, %v964_v24  ;;  %v4838_v3 = vcombine.low %v961_v25, %v965_v45 }
 0x1ed   :  { %3731 = vmatprep.subr.bf16.mxu0 %v4797_v35  ;;  %3895 = vmatprep.subr.bf16.mxu1 %v4799_v36  ;;  %v5286_v35 = vsub.s32 6, %v5204_v43  ;;  %v4845_v36 = vcombine.high %v968_v29, %v972_v30 }
 0x1f0   :  { %3732 = vmatpush1.bf16.msra.mxu0 %v4796_v41  ;;  %3896 = vmatpush1.bf16.msra.mxu1 %v4798_v42  ;;  %v981_v41 = vld [vmem:[#allocation9 + $0xfa8] sm:$0xff]  ;;  %v4844_v42 = vcombine.low %v968_v29, %v972_v30 }
 0x1f1   :  { %3733 = vmatprep.subr.bf16.mxu0 %v4805_v49  ;;  %3897 = vmatprep.subr.bf16.mxu1 %v4807_v51  ;;  %v4846_v49 = vcombine.low %v969_v31, %v973_v32  ;;  %v4938_v51 = vld [vmem:[#allocation8] sm:$0xff]  ;;  %v4855_v43 = vcombine.high %v977_v39, %v981_v41 }
 0x1f2   :  { %v443_v15 = vrot.slane %v4938_v51, %v5286_v35  ;;  %v519_v51 = vld [vmem:[#allocation9 + $0x138] sm:$0xff] }
 0x1f4   :  { %3734 = vmatpush1.bf16.msra.mxu0 %v4804_v55  ;;  %3898 = vmatpush1.bf16.msra.mxu1 %v4806_v57  ;;  %v985_v55 = vld [vmem:[#allocation9 + $0xfc8] sm:$0xff]  ;;  %v462_v63 = vadd.f32 %v443_v15, %v5241_v61  ;;  %v491_v61 = vld [vmem:[#allocation9 + $0x58] sm:$0xff] }
 0x1f5   :  { %3735 = vmatprep.subr.bf16.mxu0 %v4813_v60  ;;  %3899 = vmatprep.subr.bf16.mxu1 %v4815_v62  ;;  %v989_v57 = vld [vmem:[#allocation9 + $0xfe8] sm:$0xff]  ;;  %v4852_v60 = vcombine.low %v976_v38, %v980_v56  ;;  %v4854_v62 = vcombine.low %v977_v39, %v981_v41 }
 0x1f6   :  { %v4863_v2 = vcombine.high %v985_v55, %v989_v57  ;;  %v4862_v11 = vcombine.low %v985_v55, %v989_v57  ;;  %v470_v16 = vmax.f32 %v462_v63, 0.0  ;;  %v526_v55 = vld [vmem:[#allocation9 + $0x170] sm:$0xff]  ;;  %v523_v57 = vld [vmem:[#allocation9 + $0x158] sm:$0xff] }
 0x1f8   :  { %3736 = vmatpush1.bf16.msra.mxu0 %v4812_v7  ;;  %3900 = vmatpush1.bf16.msra.mxu1 %v4814_v8  ;;  %v486_v7 = vld [vmem:[#allocation9 + $0x30] sm:$0xff]  ;;  %v483_v8 = vld [vmem:[#allocation9 + $0x18] sm:$0xff]  ;;  %v5290_v23 = vpack.c.bf16 %v470_v16, %v470_v16 }
 0x1f9   :  { %3737 = vmatprep.subr.bf16.mxu0 %v4821_v9  ;;  %3901 = vmatprep.subr.bf16.mxu1 %v4823_v10  ;;  %v487_v9 = vld [vmem:[#allocation9 + $0x38] sm:$0xff]  ;;  %v4860_v10 = vcombine.low %v984_v53, %v988_v54  ;;  %v4361_v17 = vcombine.high %v482_v5, %v486_v7  ;;  %v522_v54 = vld [vmem:[#allocation9 + $0x150] sm:$0xff] }
 0x1fa   :  { %v4363_v18 = vcombine.high %v483_v8, %v487_v9  ;;  %v4362_v24 = vcombine.low %v483_v8, %v487_v9  ;;  %v531_v8 = vld [vmem:[#allocation9 + $0x198] sm:$0xff] }
 0x1fb   :  { %v535_v9 = vld [vmem:[#allocation9 + $0x1b8] sm:$0xff] }
 0x1fc   :  { %3738 = vmatpush1.bf16.msra.mxu0 %v4820_v19  ;;  %3902 = vmatpush1.bf16.msra.mxu1 %v4822_v20  ;;  %v490_v19 = vld [vmem:[#allocation9 + $0x50] sm:$0xff] }
 0x1fd   :  { %3739 = vmatprep.subr.bf16.mxu0 %v4829_v21  ;;  %3903 = vmatprep.subr.bf16.mxu1 %v4831_v22  ;;  %v494_v20 = vld [vmem:[#allocation9 + $0x70] sm:$0xff]  ;;  %v495_v21 = vld [vmem:[#allocation9 + $0x78] sm:$0xff]  ;;  %v4360_v22 = vcombine.low %v482_v5, %v486_v7 }
 0x1fe   :  { %v4369_v25 = vcombine.high %v490_v19, %v494_v20  ;;  %v4371_v45 = vcombine.high %v491_v61, %v495_v21  ;;  %v4368_v29 = vcombine.low %v490_v19, %v494_v20  ;;  %v4370_v30 = vcombine.low %v491_v61, %v495_v21  ;;  %v530_v5 = vld [vmem:[#allocation9 + $0x190] sm:$0xff]  ;;  %v539_v20 = vld [vmem:[#allocation9 + $0x1d8] sm:$0xff] }
 0x1ff   :  { %v534_v7 = vld [vmem:[#allocation9 + $0x1b0] sm:$0xff]  ;;  %v543_v61 = vld [vmem:[#allocation9 + $0x1f8] sm:$0xff] }
 0x200   :  { %3740 = vmatpush1.bf16.msra.mxu0 %v4828_v26  ;;  %3904 = vmatpush1.bf16.msra.mxu1 %v4830_v14  ;;  %v498_v26 = vld [vmem:[#allocation9 + $0x90] sm:$0xff]  ;;  %v4409_v16 = vcombine.high %v530_v5, %v534_v7  ;;  %v4408_v21 = vcombine.low %v530_v5, %v534_v7  ;;  %v579_v7 = vld [vmem:[#allocation9 + $0x318] sm:$0xff] }
 0x201   :  { %3741 = vmatprep.subr.bf16.mxu0 %v4837_v27  ;;  %3905 = vmatprep.subr.bf16.mxu1 %v4839_v28  ;;  %v502_v14 = vld [vmem:[#allocation9 + $0xb0] sm:$0xff]  ;;  %v499_v27 = vld [vmem:[#allocation9 + $0x98] sm:$0xff] }
 0x202   :  { %v503_v28 = vld [vmem:[#allocation9 + $0xb8] sm:$0xff]  ;;  %v4377_v31 = vcombine.high %v498_v26, %v502_v14  ;;  %v4376_v38 = vcombine.low %v498_v26, %v502_v14  ;;  %v542_v19 = vld [vmem:[#allocation9 + $0x1f0] sm:$0xff] }
 0x203   :  { %v4379_v32 = vcombine.high %v499_v27, %v503_v28  ;;  %v4378_v56 = vcombine.low %v499_v27, %v503_v28  ;;  %v550_v26 = vld [vmem:[#allocation9 + $0x230] sm:$0xff]  ;;  %v547_v14 = vld [vmem:[#allocation9 + $0x218] sm:$0xff] }
 0x204   :  { %3742 = vmatpush1.bf16.msra.mxu0 %v4836_v34  ;;  %3906 = vmatpush1.bf16.msra.mxu1 %v4838_v3  ;;  %v506_v34 = vld [vmem:[#allocation9 + $0xd0] sm:$0xff]  ;;  %v551_v27 = vld [vmem:[#allocation9 + $0x238] sm:$0xff] }
 0x205   :  { %3743 = vmatprep.subr.bf16.mxu0 %v4845_v36  ;;  %3907 = vmatprep.subr.bf16.mxu1 %v4847_v37  ;;  %v510_v3 = vld [vmem:[#allocation9 + $0xf0] sm:$0xff]  ;;  %v507_v36 = vld [vmem:[#allocation9 + $0xd8] sm:$0xff] }
 0x206   :  { %v511_v37 = vld [vmem:[#allocation9 + $0xf8] sm:$0xff]  ;;  %v4385_v39 = vcombine.high %v506_v34, %v510_v3  ;;  %v4384_v15 = vcombine.low %v506_v34, %v510_v3  ;;  %v558_v34 = vld [vmem:[#allocation9 + $0x270] sm:$0xff] }
 0x207   :  { %v4387_v41 = vcombine.high %v507_v36, %v511_v37  ;;  %v555_v3 = vld [vmem:[#allocation9 + $0x258] sm:$0xff]  ;;  %v582_v5 = vld [vmem:[#allocation9 + $0x330] sm:$0xff] }
 0x208   :  { %3744 = vmatpush1.bf16.msra.mxu0 %v4844_v42  ;;  %3908 = vmatpush1.bf16.msra.mxu1 %v4846_v49  ;;  %v514_v42 = vld [vmem:[#allocation9 + $0x110] sm:$0xff] }
 0x209   :  { %3745 = vmatprep.subr.bf16.mxu0 %v4853_v52  ;;  %3909 = vmatprep.subr.bf16.mxu1 %v4855_v43  ;;  %v518_v49 = vld [vmem:[#allocation9 + $0x130] sm:$0xff]  ;;  %v4386_v52 = vcombine.low %v507_v36, %v511_v37  ;;  %v559_v36 = vld [vmem:[#allocation9 + $0x278] sm:$0xff] }
 0x20a   :  { %v4393_v43 = vcombine.high %v514_v42, %v518_v49 }
 0x20c   :  { %3746 = vmatpush1.bf16.msra.mxu0 %v4852_v60  ;;  %3910 = vmatpush1.bf16.msra.mxu1 %v4854_v62  ;;  %v527_v60 = vld [vmem:[#allocation9 + $0x178] sm:$0xff]  ;;  %v4392_v62 = vcombine.low %v514_v42, %v518_v49  ;;  %v566_v42 = vld [vmem:[#allocation9 + $0x2b0] sm:$0xff] }
 0x20d   :  { %3747 = vmatprep.subr.bf16.mxu0 %v4861_v1  ;;  %3911 = vmatprep.subr.bf16.mxu1 %v4863_v2  ;;  %v4401_v1 = vcombine.high %v522_v54, %v526_v55  ;;  %v4403_v2 = vcombine.high %v523_v57, %v527_v60  ;;  %v563_v49 = vld [vmem:[#allocation9 + $0x298] sm:$0xff] }
 0x210   :  { %3748 = vmatpush1.bf16.msra.mxu0 %v4860_v10  ;;  %3912 = vmatpush1.bf16.msra.mxu1 %v4862_v11  ;;  %v4400_v10 = vcombine.low %v522_v54, %v526_v55  ;;  %v4402_v11 = vcombine.low %v523_v57, %v527_v60  ;;  %v574_v54 = vld [vmem:[#allocation9 + $0x2f0] sm:$0xff]  ;;  %v571_v55 = vld [vmem:[#allocation9 + $0x2d8] sm:$0xff] }
 0x211   :  { %3922 = vmatprep.subr.bf16.mxu0 %v4361_v17  ;;  %4086 = vmatprep.subr.bf16.mxu1 %v4363_v18  ;;  %v4411_v17 = vcombine.high %v531_v8, %v535_v9  ;;  %v538_v18 = vld [vmem:[#allocation9 + $0x1d0] sm:$0xff]  ;;  %v575_v57 = vld [vmem:[#allocation9 + $0x2f8] sm:$0xff] }
 0x212   :  { %v4416_v28 = vcombine.low %v538_v18, %v542_v19 }
 0x213   :  { %3750 = vmatmul.mubr.bf16.vlgmr.msra.gmra.mrb[8].mxu0 %v5290_v23  ;;  %3914 = vmatmul.mubr.bf16.vlgmr.msra.gmra.mrb[8].mxu1 %v5290_v23 }
 0x214   :  { %3923 = vmatpush1.bf16.msra.mxu0 %v4360_v22  ;;  %3954 = vmatprep.mubr.bf16.mxu0 %v5225_v4  ;;  %v4410_v22 = vcombine.low %v531_v8, %v535_v9  ;;  %v583_v8 = vld [vmem:[#allocation9 + $0x338] sm:$0xff] }
 0x215   :  { %4087 = vmatpush1.bf16.msra.mxu1 %v4362_v24  ;;  %4118 = vmatprep.mubr.bf16.mxu1 %v5225_v4  ;;  %v515_v4 = vld [vmem:[#allocation9 + $0x118] sm:$0xff]  ;;  %v4417_v24 = vcombine.high %v538_v18, %v542_v19  ;;  %v590_v18 = vld [vmem:[#allocation9 + $0x370] sm:$0xff] }
 0x216   :  { %3924 = vmatprep.subr.bf16.mxu0 %v4369_v25  ;;  %4088 = vmatprep.subr.bf16.mxu1 %v4371_v45  ;;  %v4395_v53 = vcombine.high %v515_v4, %v519_v51  ;;  %v4394_v63 = vcombine.low %v515_v4, %v519_v51  ;;  %v4419_v25 = vcombine.high %v539_v20, %v543_v61  ;;  %v546_v45 = vld [vmem:[#allocation9 + $0x210] sm:$0xff]  ;;  %v567_v4 = vld [vmem:[#allocation9 + $0x2b8] sm:$0xff] }
 0x217   :  { %v4424_v37 = vcombine.low %v546_v45, %v550_v26  ;;  %v587_v19 = vld [vmem:[#allocation9 + $0x358] sm:$0xff] }
 0x218   :  { %3925 = vmatpush1.bf16.msra.mxu0 %v4368_v29  ;;  %v4418_v29 = vcombine.low %v539_v20, %v543_v61  ;;  %v591_v20 = vld [vmem:[#allocation9 + $0x378] sm:$0xff] }
 0x219   :  { %4089 = vmatpush1.bf16.msra.mxu1 %v4370_v30  ;;  %3926 = vmatprep.subr.bf16.mxu0 %v4377_v31  ;;  %v4425_v30 = vcombine.high %v546_v45, %v550_v26  ;;  %v4427_v31 = vcombine.high %v547_v14, %v551_v27  ;;  %v598_v45 = vld [vmem:[#allocation9 + $0x3b0] sm:$0xff]  ;;  %v595_v26 = vld [vmem:[#allocation9 + $0x398] sm:$0xff] }
 0x21a   :  { %4090 = vmatprep.subr.bf16.mxu1 %v4379_v32  ;;  %v554_v32 = vld [vmem:[#allocation9 + $0x250] sm:$0xff] }
 0x21b   :  { %v4432_v51 = vcombine.low %v554_v32, %v558_v34 }
 0x21c   :  { %3927 = vmatpush1.bf16.msra.mxu0 %v4376_v38  ;;  %v4426_v38 = vcombine.low %v547_v14, %v551_v27  ;;  %v599_v14 = vld [vmem:[#allocation9 + $0x3b8] sm:$0xff] }
 0x21d   :  { %4091 = vmatpush1.bf16.msra.mxu1 %v4378_v56  ;;  %3928 = vmatprep.subr.bf16.mxu0 %v4385_v39  ;;  %v4433_v56 = vcombine.high %v554_v32, %v558_v34  ;;  %v4435_v39 = vcombine.high %v555_v3, %v559_v36  ;;  %v606_v32 = vld [vmem:[#allocation9 + $0x3f0] sm:$0xff]  ;;  %v603_v34 = vld [vmem:[#allocation9 + $0x3d8] sm:$0xff] }
 0x21e   :  { %4092 = vmatprep.subr.bf16.mxu1 %v4387_v41  ;;  %v562_v41 = vld [vmem:[#allocation9 + $0x290] sm:$0xff] }
 0x21f   :  { %v4440_v60 = vcombine.low %v562_v41, %v566_v42 }
 0x220   :  { %3929 = vmatpush1.bf16.msra.mxu0 %v4384_v15  ;;  %v4434_v15 = vcombine.low %v555_v3, %v559_v36  ;;  %v607_v3 = vld [vmem:[#allocation9 + $0x3f8] sm:$0xff] }
 0x221   :  { %4093 = vmatpush1.bf16.msra.mxu1 %v4386_v52  ;;  %3930 = vmatprep.subr.bf16.mxu0 %v4393_v43  ;;  %v4441_v52 = vcombine.high %v562_v41, %v566_v42  ;;  %v4443_v43 = vcombine.high %v563_v49, %v567_v4  ;;  %v614_v41 = vld [vmem:[#allocation9 + $0x430] sm:$0xff]  ;;  %v611_v42 = vld [vmem:[#allocation9 + $0x418] sm:$0xff] }
 0x222   :  { %4094 = vmatprep.subr.bf16.mxu1 %v4395_v53  ;;  %v570_v53 = vld [vmem:[#allocation9 + $0x2d0] sm:$0xff] }
 0x223   :  { %v4448_v9 = vcombine.low %v570_v53, %v574_v54 }
 0x224   :  { %3931 = vmatpush1.bf16.msra.mxu0 %v4392_v62  ;;  %v4442_v62 = vcombine.low %v563_v49, %v567_v4  ;;  %v615_v49 = vld [vmem:[#allocation9 + $0x438] sm:$0xff] }
 0x225   :  { %4095 = vmatpush1.bf16.msra.mxu1 %v4394_v63  ;;  %3932 = vmatprep.subr.bf16.mxu0 %v4401_v1  ;;  %v4449_v63 = vcombine.high %v570_v53, %v574_v54  ;;  %v4451_v1 = vcombine.high %v571_v55, %v575_v57  ;;  %v622_v53 = vld [vmem:[#allocation9 + $0x470] sm:$0xff] }
 0x226   :  { %4096 = vmatprep.subr.bf16.mxu1 %v4403_v2  ;;  %v578_v2 = vld [vmem:[#allocation9 + $0x310] sm:$0xff] }
 0x227   :  { %v4456_v61 = vcombine.low %v578_v2, %v582_v5 }
 0x228   :  { %3933 = vmatpush1.bf16.msra.mxu0 %v4400_v10  ;;  %v4450_v10 = vcombine.low %v571_v55, %v575_v57  ;;  %v619_v55 = vld [vmem:[#allocation9 + $0x458] sm:$0xff] }
 0x229   :  { %4097 = vmatpush1.bf16.msra.mxu1 %v4402_v11  ;;  %3934 = vmatprep.subr.bf16.mxu0 %v4409_v16  ;;  %v4457_v11 = vcombine.high %v578_v2, %v582_v5  ;;  %v4459_v16 = vcombine.high %v579_v7, %v583_v8  ;;  %v623_v57 = vld [vmem:[#allocation9 + $0x478] sm:$0xff] }
 0x22a   :  { %4098 = vmatprep.subr.bf16.mxu1 %v4411_v17  ;;  %v586_v17 = vld [vmem:[#allocation9 + $0x350] sm:$0xff]  ;;  %v4499_v2 = vcombine.high %v619_v55, %v623_v57  ;;  %v627_v5 = vld [vmem:[#allocation9 + $0x498] sm:$0xff] }
 0x22b   :  { %v4464_v27 = vcombine.low %v586_v17, %v590_v18 }
 0x22c   :  { %3935 = vmatpush1.bf16.msra.mxu0 %v4408_v21  ;;  %v4458_v21 = vcombine.low %v579_v7, %v583_v8  ;;  %v631_v7 = vld [vmem:[#allocation9 + $0x4b8] sm:$0xff] }
 0x22d   :  { %4099 = vmatpush1.bf16.msra.mxu1 %v4410_v22  ;;  %3936 = vmatprep.subr.bf16.mxu0 %v4417_v24  ;;  %v4465_v22 = vcombine.high %v586_v17, %v590_v18  ;;  %v4467_v24 = vcombine.high %v587_v19, %v591_v20  ;;  %v638_v17 = vld [vmem:[#allocation9 + $0x4f0] sm:$0xff]  ;;  %v635_v18 = vld [vmem:[#allocation9 + $0x4d8] sm:$0xff] }
 0x22e   :  { %4100 = vmatprep.subr.bf16.mxu1 %v4419_v25  ;;  %v594_v25 = vld [vmem:[#allocation9 + $0x390] sm:$0xff] }
 0x22f   :  { %v4472_v36 = vcombine.low %v594_v25, %v598_v45 }
 0x230   :  { %3937 = vmatpush1.bf16.msra.mxu0 %v4416_v28  ;;  %v4466_v28 = vcombine.low %v587_v19, %v591_v20  ;;  %v639_v19 = vld [vmem:[#allocation9 + $0x4f8] sm:$0xff] }
 0x231   :  { %4101 = vmatpush1.bf16.msra.mxu1 %v4418_v29  ;;  %3938 = vmatprep.subr.bf16.mxu0 %v4425_v30  ;;  %v4473_v29 = vcombine.high %v594_v25, %v598_v45  ;;  %v4475_v30 = vcombine.high %v595_v26, %v599_v14  ;;  %v643_v25 = vld [vmem:[#allocation9 + $0x518] sm:$0xff] }
 0x232   :  { %4102 = vmatprep.subr.bf16.mxu1 %v4427_v31  ;;  %v602_v31 = vld [vmem:[#allocation9 + $0x3d0] sm:$0xff]  ;;  %v647_v45 = vld [vmem:[#allocation9 + $0x538] sm:$0xff] }
 0x233   :  { %v4480_v4 = vcombine.low %v602_v31, %v606_v32 }
 0x234   :  { %3939 = vmatpush1.bf16.msra.mxu0 %v4424_v37  ;;  %v4474_v37 = vcombine.low %v595_v26, %v599_v14  ;;  %v4514_v26 = vcombine.low %v635_v18, %v639_v19 }
 0x235   :  { %4103 = vmatpush1.bf16.msra.mxu1 %v4426_v38  ;;  %3940 = vmatprep.subr.bf16.mxu0 %v4433_v56  ;;  %v4481_v38 = vcombine.high %v602_v31, %v606_v32  ;;  %v4483_v56 = vcombine.high %v603_v34, %v607_v3  ;;  %v655_v31 = vld [vmem:[#allocation9 + $0x578] sm:$0xff] }
 0x236   :  { %4104 = vmatprep.subr.bf16.mxu1 %v4435_v39  ;;  %v610_v39 = vld [vmem:[#allocation9 + $0x410] sm:$0xff] }
 0x237   :  { %v4488_v54 = vcombine.low %v610_v39, %v614_v41 }
 0x238   :  { %3941 = vmatpush1.bf16.msra.mxu0 %v4432_v51  ;;  %v4482_v51 = vcombine.low %v603_v34, %v607_v3  ;;  %v4522_v34 = vcombine.low %v643_v25, %v647_v45 }
 0x239   :  { %4105 = vmatpush1.bf16.msra.mxu1 %v4434_v15  ;;  %3942 = vmatprep.subr.bf16.mxu0 %v4441_v52  ;;  %v4489_v15 = vcombine.high %v610_v39, %v614_v41  ;;  %v4491_v52 = vcombine.high %v611_v42, %v615_v49  ;;  %v663_v39 = vld [vmem:[#allocation9 + $0x5b8] sm:$0xff] }
 0x23a   :  { %4106 = vmatprep.subr.bf16.mxu1 %v4443_v43  ;;  %v618_v43 = vld [vmem:[#allocation9 + $0x450] sm:$0xff] }
 0x23b   :  { %v4496_v8 = vcombine.low %v618_v43, %v622_v53 }
 0x23c   :  { %3943 = vmatpush1.bf16.msra.mxu0 %v4440_v60  ;;  %v4490_v60 = vcombine.low %v611_v42, %v615_v49 }
 0x23d   :  { %4107 = vmatpush1.bf16.msra.mxu1 %v4442_v62  ;;  %3944 = vmatprep.subr.bf16.mxu0 %v4449_v63  ;;  %v4497_v62 = vcombine.high %v618_v43, %v622_v53  ;;  %v626_v63 = vld [vmem:[#allocation9 + $0x490] sm:$0xff]  ;;  %v671_v43 = vld [vmem:[#allocation9 + $0x5f8] sm:$0xff] }
 0x23e   :  { %4108 = vmatprep.subr.bf16.mxu1 %v4451_v1  ;;  %v630_v1 = vld [vmem:[#allocation9 + $0x4b0] sm:$0xff] }
 0x23f   :  { %v4504_v20 = vcombine.low %v626_v63, %v630_v1 }
 0x240   :  { %3945 = vmatpush1.bf16.msra.mxu0 %v4448_v9  ;;  %v4498_v9 = vcombine.low %v619_v55, %v623_v57 }
 0x241   :  { %4109 = vmatpush1.bf16.msra.mxu1 %v4450_v10  ;;  %3946 = vmatprep.subr.bf16.mxu0 %v4457_v11  ;;  %v4505_v10 = vcombine.high %v626_v63, %v630_v1  ;;  %v4507_v11 = vcombine.high %v627_v5, %v631_v7  ;;  %v675_v63 = vld [vmem:[#allocation9 + $0x618] sm:$0xff] }
 0x242   :  { %4110 = vmatprep.subr.bf16.mxu1 %v4459_v16  ;;  %v634_v16 = vld [vmem:[#allocation9 + $0x4d0] sm:$0xff]  ;;  %v679_v1 = vld [vmem:[#allocation9 + $0x638] sm:$0xff] }
 0x244   :  { %3947 = vmatpush1.bf16.msra.mxu0 %v4456_v61  ;;  %v4513_v61 = vcombine.high %v634_v16, %v638_v17 }
 0x245   :  { %4111 = vmatpush1.bf16.msra.mxu1 %v4458_v21  ;;  %3948 = vmatprep.subr.bf16.mxu0 %v4465_v22  ;;  %v4515_v21 = vcombine.high %v635_v18, %v639_v19  ;;  %v642_v22 = vld [vmem:[#allocation9 + $0x510] sm:$0xff]  ;;  %v4554_v18 = vcombine.low %v675_v63, %v679_v1 }
 0x246   :  { %4112 = vmatprep.subr.bf16.mxu1 %v4467_v24  ;;  %v646_v24 = vld [vmem:[#allocation9 + $0x530] sm:$0xff] }
 0x247   :  { %v4521_v14 = vcombine.high %v642_v22, %v646_v24  ;;  %v4520_v32 = vcombine.low %v642_v22, %v646_v24  ;;  %v695_v22 = vld [vmem:[#allocation9 + $0x6b8] sm:$0xff] }
 0x248   :  { %3949 = vmatpush1.bf16.msra.mxu0 %v4464_v27  ;;  %v4523_v27 = vcombine.high %v643_v25, %v647_v45 }
 0x249   :  { %4113 = vmatpush1.bf16.msra.mxu1 %v4466_v28  ;;  %3950 = vmatprep.subr.bf16.mxu0 %v4473_v29  ;;  %v650_v28 = vld [vmem:[#allocation9 + $0x550] sm:$0xff] }
 0x24a   :  { %4114 = vmatprep.subr.bf16.mxu1 %v4475_v30  ;;  %v654_v29 = vld [vmem:[#allocation9 + $0x570] sm:$0xff]  ;;  %v651_v30 = vld [vmem:[#allocation9 + $0x558] sm:$0xff] }
 0x24b   :  { %v4529_v3 = vcombine.high %v650_v28, %v654_v29  ;;  %v4528_v41 = vcombine.low %v650_v28, %v654_v29  ;;  %v4530_v42 = vcombine.low %v651_v30, %v655_v31  ;;  %v703_v28 = vld [vmem:[#allocation9 + $0x6f8] sm:$0xff] }
 0x24c   :  { %3951 = vmatpush1.bf16.msra.mxu0 %v4472_v36  ;;  %v4531_v36 = vcombine.high %v651_v30, %v655_v31 }
 0x24d   :  { %4115 = vmatpush1.bf16.msra.mxu1 %v4474_v37  ;;  %3952 = vmatprep.subr.bf16.mxu0 %v4481_v38  ;;  %v658_v37 = vld [vmem:[#allocation9 + $0x590] sm:$0xff] }
 0x24e   :  { %4116 = vmatprep.subr.bf16.mxu1 %v4483_v56  ;;  %v662_v38 = vld [vmem:[#allocation9 + $0x5b0] sm:$0xff]  ;;  %v659_v56 = vld [vmem:[#allocation9 + $0x598] sm:$0xff] }
 0x24f   :  { %v4537_v49 = vcombine.high %v658_v37, %v662_v38  ;;  %v4536_v53 = vcombine.low %v658_v37, %v662_v38  ;;  %v711_v37 = vld [vmem:[#allocation9 + $0x738] sm:$0xff] }
 0x250   :  { %3953 = vmatpush1.bf16.msra.mxu0 %v4480_v4  ;;  %v4539_v4 = vcombine.high %v659_v56, %v663_v39 }
 0x251   :  { %4117 = vmatpush1.bf16.msra.mxu1 %v4482_v51  ;;  %3963 = vmatprep.subr.bf16.mxu0 %v4489_v15  ;;  %v666_v51 = vld [vmem:[#allocation9 + $0x5d0] sm:$0xff] }
 0x252   :  { %4127 = vmatprep.subr.bf16.mxu1 %v4491_v52  ;;  %v670_v15 = vld [vmem:[#allocation9 + $0x5f0] sm:$0xff]  ;;  %v667_v52 = vld [vmem:[#allocation9 + $0x5d8] sm:$0xff] }
 0x253   :  { %3955 = vmatmul.mubr.bf16.vlgmr.msra.gmra.mrb[12].mxu0 %v5227_v6  ;;  %v4545_v55 = vcombine.high %v666_v51, %v670_v15  ;;  %v4547_v57 = vcombine.high %v667_v52, %v671_v43 }
 0x254   :  { %4119 = vmatmul.mubr.bf16.vlgmr.msra.gmra.mrb[12].mxu1 %v5227_v6  ;;  %3964 = vmatpush1.bf16.msra.mxu0 %v4488_v54  ;;  %v4506_v6 = vcombine.low %v627_v5, %v631_v7  ;;  %v4538_v54 = vcombine.low %v659_v56, %v663_v39  ;;  %v4546_v5 = vcombine.low %v667_v52, %v671_v43 }
 0x255   :  { %3995 = vmatprep.mubr.bf16.mxu0 %v5231_v13  ;;  %4128 = vmatpush1.bf16.msra.mxu1 %v4490_v60  ;;  %v674_v60 = vld [vmem:[#allocation9 + $0x610] sm:$0xff] }
 0x256   :  { %4159 = vmatprep.mubr.bf16.mxu1 %v5231_v13  ;;  %3965 = vmatprep.subr.bf16.mxu0 %v4497_v62  ;;  %v4512_v13 = vcombine.low %v634_v16, %v638_v17  ;;  %v678_v62 = vld [vmem:[#allocation9 + $0x630] sm:$0xff]  ;;  %v687_v16 = vld [vmem:[#allocation9 + $0x678] sm:$0xff] }
 0x257   :  { %4129 = vmatprep.subr.bf16.mxu1 %v4499_v2  ;;  %v4544_v2 = vcombine.low %v666_v51, %v670_v15  ;;  %v4553_v7 = vcombine.high %v674_v60, %v678_v62  ;;  %v4552_v17 = vcombine.low %v674_v60, %v678_v62  ;;  %v719_v51 = vld [vmem:[#allocation9 + $0x778] sm:$0xff] }
 0x258   :  { %3966 = vmatpush1.bf16.msra.mxu0 %v4496_v8  ;;  %v4555_v8 = vcombine.high %v675_v63, %v679_v1  ;;  %v727_v60 = vld [vmem:[#allocation9 + $0x7b8] sm:$0xff] }
 0x259   :  { %4130 = vmatpush1.bf16.msra.mxu1 %v4498_v9  ;;  %3967 = vmatprep.subr.bf16.mxu0 %v4505_v10  ;;  %v682_v9 = vld [vmem:[#allocation9 + $0x650] sm:$0xff] }
 0x25a   :  { %4131 = vmatprep.subr.bf16.mxu1 %v4507_v11  ;;  %v686_v10 = vld [vmem:[#allocation9 + $0x670] sm:$0xff]  ;;  %v683_v11 = vld [vmem:[#allocation9 + $0x658] sm:$0xff] }
 0x25b   :  { %v4561_v19 = vcombine.high %v682_v9, %v686_v10  ;;  %v4560_v24 = vcombine.low %v682_v9, %v686_v10  ;;  %v4562_v25 = vcombine.low %v683_v11, %v687_v16  ;;  %v735_v9 = vld [vmem:[#allocation9 + $0x7f8] sm:$0xff] }
 0x25c   :  { %3968 = vmatpush1.bf16.msra.mxu0 %v4504_v20  ;;  %v4563_v20 = vcombine.high %v683_v11, %v687_v16 }
 0x25d   :  { %4132 = vmatpush1.bf16.msra.mxu1 %v4506_v6  ;;  %3969 = vmatprep.subr.bf16.mxu0 %v4513_v61  ;;  %v690_v6 = vld [vmem:[#allocation9 + $0x690] sm:$0xff] }
 0x25e   :  { %4133 = vmatprep.subr.bf16.mxu1 %v4515_v21  ;;  %v694_v61 = vld [vmem:[#allocation9 + $0x6b0] sm:$0xff]  ;;  %v691_v21 = vld [vmem:[#allocation9 + $0x698] sm:$0xff] }
 0x25f   :  { %v4569_v45 = vcombine.high %v690_v6, %v694_v61  ;;  %v4568_v29 = vcombine.low %v690_v6, %v694_v61  ;;  %v4570_v30 = vcombine.low %v691_v21, %v695_v22  ;;  %v743_v6 = vld [vmem:[#allocation9 + $0x838] sm:$0xff] }
 0x260   :  { %3970 = vmatpush1.bf16.msra.mxu0 %v4512_v13  ;;  %v4571_v13 = vcombine.high %v691_v21, %v695_v22 }
 0x261   :  { %4134 = vmatpush1.bf16.msra.mxu1 %v4514_v26  ;;  %3971 = vmatprep.subr.bf16.mxu0 %v4521_v14  ;;  %v698_v26 = vld [vmem:[#allocation9 + $0x6d0] sm:$0xff] }
 0x262   :  { %4135 = vmatprep.subr.bf16.mxu1 %v4523_v27  ;;  %v702_v14 = vld [vmem:[#allocation9 + $0x6f0] sm:$0xff]  ;;  %v699_v27 = vld [vmem:[#allocation9 + $0x6d8] sm:$0xff] }
 0x263   :  { %v4577_v31 = vcombine.high %v698_v26, %v702_v14  ;;  %v4576_v38 = vcombine.low %v698_v26, %v702_v14  ;;  %v4578_v56 = vcombine.low %v699_v27, %v703_v28  ;;  %v747_v26 = vld [vmem:[#allocation9 + $0x858] sm:$0xff] }
 0x264   :  { %3972 = vmatpush1.bf16.msra.mxu0 %v4520_v32  ;;  %v4579_v32 = vcombine.high %v699_v27, %v703_v28  ;;  %v751_v14 = vld [vmem:[#allocation9 + $0x878] sm:$0xff] }
 0x265   :  { %4136 = vmatpush1.bf16.msra.mxu1 %v4522_v34  ;;  %3973 = vmatprep.subr.bf16.mxu0 %v4529_v3  ;;  %v706_v34 = vld [vmem:[#allocation9 + $0x710] sm:$0xff] }
 0x266   :  { %4137 = vmatprep.subr.bf16.mxu1 %v4531_v36  ;;  %v710_v3 = vld [vmem:[#allocation9 + $0x730] sm:$0xff]  ;;  %v707_v36 = vld [vmem:[#allocation9 + $0x718] sm:$0xff] }
 0x267   :  { %v4585_v39 = vcombine.high %v706_v34, %v710_v3  ;;  %v4584_v15 = vcombine.low %v706_v34, %v710_v3  ;;  %v4586_v52 = vcombine.low %v707_v36, %v711_v37  ;;  %v759_v34 = vld [vmem:[#allocation9 + $0x8b8] sm:$0xff] }
 0x268   :  { %3974 = vmatpush1.bf16.msra.mxu0 %v4528_v41  ;;  %v4587_v41 = vcombine.high %v707_v36, %v711_v37  ;;  %v4626_v36 = vcombine.low %v747_v26, %v751_v14 }
 0x269   :  { %4138 = vmatpush1.bf16.msra.mxu1 %v4530_v42  ;;  %3975 = vmatprep.subr.bf16.mxu0 %v4537_v49  ;;  %v714_v42 = vld [vmem:[#allocation9 + $0x750] sm:$0xff] }
 0x26a   :  { %4139 = vmatprep.subr.bf16.mxu1 %v4539_v4  ;;  %v718_v49 = vld [vmem:[#allocation9 + $0x770] sm:$0xff]  ;;  %v715_v4 = vld [vmem:[#allocation9 + $0x758] sm:$0xff] }
 0x26b   :  { %v4593_v43 = vcombine.high %v714_v42, %v718_v49  ;;  %v4592_v62 = vcombine.low %v714_v42, %v718_v49  ;;  %v4594_v63 = vcombine.low %v715_v4, %v719_v51  ;;  %v767_v42 = vld [vmem:[#allocation9 + $0x8f8] sm:$0xff] }
 0x26c   :  { %3976 = vmatpush1.bf16.msra.mxu0 %v4536_v53  ;;  %v4595_v53 = vcombine.high %v715_v4, %v719_v51 }
 0x26d   :  { %4140 = vmatpush1.bf16.msra.mxu1 %v4538_v54  ;;  %3977 = vmatprep.subr.bf16.mxu0 %v4545_v55  ;;  %v722_v54 = vld [vmem:[#allocation9 + $0x790] sm:$0xff] }
 0x26e   :  { %4141 = vmatprep.subr.bf16.mxu1 %v4547_v57  ;;  %v726_v55 = vld [vmem:[#allocation9 + $0x7b0] sm:$0xff]  ;;  %v723_v57 = vld [vmem:[#allocation9 + $0x798] sm:$0xff] }
 0x26f   :  { %v4601_v1 = vcombine.high %v722_v54, %v726_v55  ;;  %v4600_v10 = vcombine.low %v722_v54, %v726_v55  ;;  %v4602_v11 = vcombine.low %v723_v57, %v727_v60 }
 0x270   :  { %3978 = vmatpush1.bf16.msra.mxu0 %v4544_v2  ;;  %v4603_v2 = vcombine.high %v723_v57, %v727_v60  ;;  %v778_v60 = vld [vmem:[#allocation9 + $0x950] sm:$0xff] }
 0x271   :  { %4142 = vmatpush1.bf16.msra.mxu1 %v4546_v5  ;;  %3979 = vmatprep.subr.bf16.mxu0 %v4553_v7  ;;  %v730_v5 = vld [vmem:[#allocation9 + $0x7d0] sm:$0xff] }
 0x272   :  { %4143 = vmatprep.subr.bf16.mxu1 %v4555_v8  ;;  %v734_v7 = vld [vmem:[#allocation9 + $0x7f0] sm:$0xff]  ;;  %v731_v8 = vld [vmem:[#allocation9 + $0x7d8] sm:$0xff] }
 0x273   :  { %v4609_v16 = vcombine.high %v730_v5, %v734_v7  ;;  %v4608_v61 = vcombine.low %v730_v5, %v734_v7  ;;  %v4610_v21 = vcombine.low %v731_v8, %v735_v9 }
 0x274   :  { %3980 = vmatpush1.bf16.msra.mxu0 %v4552_v17  ;;  %v4611_v17 = vcombine.high %v731_v8, %v735_v9  ;;  %v786_v9 = vld [vmem:[#allocation9 + $0x990] sm:$0xff] }
 0x275   :  { %4144 = vmatpush1.bf16.msra.mxu1 %v4554_v18  ;;  %3981 = vmatprep.subr.bf16.mxu0 %v4561_v19  ;;  %v738_v18 = vld [vmem:[#allocation9 + $0x810] sm:$0xff] }
 0x276   :  { %4145 = vmatprep.subr.bf16.mxu1 %v4563_v20  ;;  %v742_v19 = vld [vmem:[#allocation9 + $0x830] sm:$0xff]  ;;  %v739_v20 = vld [vmem:[#allocation9 + $0x818] sm:$0xff] }
 0x277   :  { %v4617_v22 = vcombine.high %v738_v18, %v742_v19  ;;  %v4618_v27 = vcombine.low %v739_v20, %v743_v6 }
 0x278   :  { %3982 = vmatpush1.bf16.msra.mxu0 %v4560_v24  ;;  %v4619_v24 = vcombine.high %v739_v20, %v743_v6  ;;  %v794_v6 = vld [vmem:[#allocation9 + $0x9d0] sm:$0xff] }
 0x279   :  { %4146 = vmatpush1.bf16.msra.mxu1 %v4562_v25  ;;  %3983 = vmatprep.subr.bf16.mxu0 %v4569_v45  ;;  %v746_v25 = vld [vmem:[#allocation9 + $0x850] sm:$0xff] }
 0x27a   :  { %4147 = vmatprep.subr.bf16.mxu1 %v4571_v13  ;;  %v750_v45 = vld [vmem:[#allocation9 + $0x870] sm:$0xff]  ;;  %v4616_v13 = vcombine.low %v738_v18, %v742_v19 }
 0x27b   :  { %v4625_v28 = vcombine.high %v746_v25, %v750_v45  ;;  %v4624_v3 = vcombine.low %v746_v25, %v750_v45 }
 0x27c   :  { %3984 = vmatpush1.bf16.msra.mxu0 %v4568_v29  ;;  %v754_v29 = vld [vmem:[#allocation9 + $0x890] sm:$0xff] }
 0x27d   :  { %4148 = vmatpush1.bf16.msra.mxu1 %v4570_v30  ;;  %3985 = vmatprep.subr.bf16.mxu0 %v4577_v31  ;;  %v758_v30 = vld [vmem:[#allocation9 + $0x8b0] sm:$0xff]  ;;  %v4627_v31 = vcombine.high %v747_v26, %v751_v14 }
 0x27e   :  { %4149 = vmatprep.subr.bf16.mxu1 %v4579_v32  ;;  %v755_v32 = vld [vmem:[#allocation9 + $0x898] sm:$0xff]  ;;  %v4633_v37 = vcombine.high %v754_v29, %v758_v30  ;;  %v4632_v49 = vcombine.low %v754_v29, %v758_v30  ;;  %v802_v26 = vld [vmem:[#allocation9 + $0xa10] sm:$0xff] }
 0x27f   :  { %v806_v14 = vld [vmem:[#allocation9 + $0xa30] sm:$0xff] }
 0x280   :  { %3986 = vmatpush1.bf16.msra.mxu0 %v4576_v38  ;;  %v4635_v38 = vcombine.high %v755_v32, %v759_v34 }
 0x281   :  { %4150 = vmatpush1.bf16.msra.mxu1 %v4578_v56  ;;  %3987 = vmatprep.subr.bf16.mxu0 %v4585_v39  ;;  %v762_v56 = vld [vmem:[#allocation9 + $0x8d0] sm:$0xff] }
 0x282   :  { %4151 = vmatprep.subr.bf16.mxu1 %v4587_v41  ;;  %v766_v39 = vld [vmem:[#allocation9 + $0x8f0] sm:$0xff]  ;;  %v763_v41 = vld [vmem:[#allocation9 + $0x8d8] sm:$0xff] }
 0x283   :  { %v4641_v4 = vcombine.high %v762_v56, %v766_v39  ;;  %v4643_v51 = vcombine.high %v763_v41, %v767_v42  ;;  %v4642_v54 = vcombine.low %v763_v41, %v767_v42  ;;  %v818_v42 = vld [vmem:[#allocation9 + $0xa90] sm:$0xff] }
 0x284   :  { %3988 = vmatpush1.bf16.msra.mxu0 %v4584_v15  ;;  %v770_v15 = vld [vmem:[#allocation9 + $0x910] sm:$0xff] }
 0x285   :  { %4152 = vmatpush1.bf16.msra.mxu1 %v4586_v52  ;;  %3989 = vmatprep.subr.bf16.mxu0 %v4593_v43  ;;  %v774_v52 = vld [vmem:[#allocation9 + $0x930] sm:$0xff]  ;;  %v771_v43 = vld [vmem:[#allocation9 + $0x918] sm:$0xff] }
 0x286   :  { %4153 = vmatprep.subr.bf16.mxu1 %v4595_v53  ;;  %v775_v53 = vld [vmem:[#allocation9 + $0x938] sm:$0xff]  ;;  %v4649_v55 = vcombine.high %v770_v15, %v774_v52 }
 0x287   :  { %v4651_v57 = vcombine.high %v771_v43, %v775_v53  ;;  %v4650_v5 = vcombine.low %v771_v43, %v775_v53  ;;  %v826_v53 = vld [vmem:[#allocation9 + $0xad0] sm:$0xff] }
 0x288   :  { %3990 = vmatpush1.bf16.msra.mxu0 %v4592_v62  ;;  %v782_v62 = vld [vmem:[#allocation9 + $0x970] sm:$0xff] }
 0x289   :  { %4154 = vmatpush1.bf16.msra.mxu1 %v4594_v63  ;;  %3991 = vmatprep.subr.bf16.mxu0 %v4601_v1  ;;  %v779_v63 = vld [vmem:[#allocation9 + $0x958] sm:$0xff]  ;;  %v4657_v7 = vcombine.high %v778_v60, %v782_v62 }
 0x28a   :  { %4155 = vmatprep.subr.bf16.mxu1 %v4603_v2  ;;  %v783_v1 = vld [vmem:[#allocation9 + $0x978] sm:$0xff]  ;;  %v4648_v2 = vcombine.low %v770_v15, %v774_v52 }
 0x28b   :  { %v4659_v8 = vcombine.high %v779_v63, %v783_v1  ;;  %v4658_v18 = vcombine.low %v779_v63, %v783_v1  ;;  %v834_v1 = vld [vmem:[#allocation9 + $0xb10] sm:$0xff] }
 0x28c   :  { %3992 = vmatpush1.bf16.msra.mxu0 %v4600_v10  ;;  %v790_v10 = vld [vmem:[#allocation9 + $0x9b0] sm:$0xff] }
 0x28d   :  { %4156 = vmatpush1.bf16.msra.mxu1 %v4602_v11  ;;  %3993 = vmatprep.subr.bf16.mxu0 %v4609_v16  ;;  %v787_v11 = vld [vmem:[#allocation9 + $0x998] sm:$0xff]  ;;  %v4665_v19 = vcombine.high %v786_v9, %v790_v10 }
 0x28e   :  { %4157 = vmatprep.subr.bf16.mxu1 %v4611_v17  ;;  %v791_v16 = vld [vmem:[#allocation9 + $0x9b8] sm:$0xff]  ;;  %v4656_v17 = vcombine.low %v778_v60, %v782_v62 }
 0x28f   :  { %v4667_v20 = vcombine.high %v787_v11, %v791_v16  ;;  %v4666_v25 = vcombine.low %v787_v11, %v791_v16  ;;  %v842_v16 = vld [vmem:[#allocation9 + $0xb50] sm:$0xff] }
 0x290   :  { %3994 = vmatpush1.bf16.msra.mxu0 %v4608_v61  ;;  %v798_v61 = vld [vmem:[#allocation9 + $0x9f0] sm:$0xff] }
 0x291   :  { %4158 = vmatpush1.bf16.msra.mxu1 %v4610_v21  ;;  %4004 = vmatprep.subr.bf16.mxu0 %v4617_v22  ;;  %v795_v21 = vld [vmem:[#allocation9 + $0x9d8] sm:$0xff]  ;;  %v4673_v45 = vcombine.high %v794_v6, %v798_v61  ;;  %v4672_v29 = vcombine.low %v794_v6, %v798_v61 }
 0x292   :  { %4168 = vmatprep.subr.bf16.mxu1 %v4619_v24  ;;  %v799_v22 = vld [vmem:[#allocation9 + $0x9f8] sm:$0xff]  ;;  %v4664_v24 = vcombine.low %v786_v9, %v790_v10 }
 0x293   :  { %3996 = vmatmul.mubr.bf16.vlgmr.msra.gmra.mrb[12].mxu0 %v5257_v50  ;;  %v4674_v30 = vcombine.low %v795_v21, %v799_v22 }
 0x294   :  { %4160 = vmatmul.mubr.bf16.vlgmr.msra.gmra.mrb[12].mxu1 %v5257_v50  ;;  %4005 = vmatpush1.bf16.msra.mxu0 %v4616_v13  ;;  %v4634_v50 = vcombine.low %v755_v32, %v759_v34  ;;  %v4675_v13 = vcombine.high %v795_v21, %v799_v22  ;;  %v810_v34 = vld [vmem:[#allocation9 + $0xa50] sm:$0xff] }
 0x295   :  { %4036 = vmatprep.mubr.bf16.mxu0 %v5259_v59  ;;  %4169 = vmatpush1.bf16.msra.mxu1 %v4618_v27  ;;  %v803_v27 = vld [vmem:[#allocation9 + $0xa18] sm:$0xff]  ;;  %v850_v22 = vld [vmem:[#allocation9 + $0xb90] sm:$0xff] }
 0x296   :  { %4200 = vmatprep.mubr.bf16.mxu1 %v5259_v59  ;;  %4006 = vmatprep.subr.bf16.mxu0 %v4625_v28  ;;  %v4640_v59 = vcombine.low %v762_v56, %v766_v39  ;;  %v807_v28 = vld [vmem:[#allocation9 + $0xa38] sm:$0xff] }
 0x297   :  { %4170 = vmatprep.subr.bf16.mxu1 %v4627_v31  ;;  %v4681_v31 = vcombine.high %v802_v26, %v806_v14  ;;  %v4683_v32 = vcombine.high %v803_v27, %v807_v28  ;;  %v4682_v56 = vcombine.low %v803_v27, %v807_v28  ;;  %v858_v28 = vld [vmem:[#allocation9 + $0xbd0] sm:$0xff] }
 0x298   :  { %4007 = vmatpush1.bf16.msra.mxu0 %v4624_v3  ;;  %v814_v3 = vld [vmem:[#allocation9 + $0xa70] sm:$0xff] }
 0x299   :  { %4171 = vmatpush1.bf16.msra.mxu1 %v4626_v36  ;;  %4008 = vmatprep.subr.bf16.mxu0 %v4633_v37  ;;  %v811_v36 = vld [vmem:[#allocation9 + $0xa58] sm:$0xff]  ;;  %v4689_v39 = vcombine.high %v810_v34, %v814_v3 }
 0x29a   :  { %4172 = vmatprep.subr.bf16.mxu1 %v4635_v38  ;;  %v815_v37 = vld [vmem:[#allocation9 + $0xa78] sm:$0xff]  ;;  %v4680_v38 = vcombine.low %v802_v26, %v806_v14 }
 0x29b   :  { %v4691_v41 = vcombine.high %v811_v36, %v815_v37  ;;  %v4690_v15 = vcombine.low %v811_v36, %v815_v37  ;;  %v866_v37 = vld [vmem:[#allocation9 + $0xc10] sm:$0xff] }
 0x29c   :  { %4009 = vmatpush1.bf16.msra.mxu0 %v4632_v49  ;;  %v822_v49 = vld [vmem:[#allocation9 + $0xab0] sm:$0xff] }
 0x29d   :  { %4173 = vmatpush1.bf16.msra.mxu1 %v4634_v50  ;;  %4010 = vmatprep.subr.bf16.mxu0 %v4641_v4  ;;  %v819_v50 = vld [vmem:[#allocation9 + $0xa98] sm:$0xff]  ;;  %v4697_v52 = vcombine.high %v818_v42, %v822_v49 }
 0x29e   :  { %4174 = vmatprep.subr.bf16.mxu1 %v4643_v51  ;;  %v823_v4 = vld [vmem:[#allocation9 + $0xab8] sm:$0xff]  ;;  %v4688_v51 = vcombine.low %v810_v34, %v814_v3 }
 0x29f   :  { %v4699_v43 = vcombine.high %v819_v50, %v823_v4  ;;  %v4698_v60 = vcombine.low %v819_v50, %v823_v4  ;;  %v874_v4 = vld [vmem:[#allocation9 + $0xc50] sm:$0xff] }
 0x2a0   :  { %4011 = vmatpush1.bf16.msra.mxu0 %v4640_v59  ;;  %v830_v59 = vld [vmem:[#allocation9 + $0xaf0] sm:$0xff] }
 0x2a1   :  { %4175 = vmatpush1.bf16.msra.mxu1 %v4642_v54  ;;  %4012 = vmatprep.subr.bf16.mxu0 %v4649_v55  ;;  %v827_v54 = vld [vmem:[#allocation9 + $0xad8] sm:$0xff]  ;;  %v4705_v62 = vcombine.high %v826_v53, %v830_v59 }
 0x2a2   :  { %4176 = vmatprep.subr.bf16.mxu1 %v4651_v57  ;;  %v831_v55 = vld [vmem:[#allocation9 + $0xaf8] sm:$0xff]  ;;  %v4696_v57 = vcombine.low %v818_v42, %v822_v49 }
 0x2a3   :  { %v4707_v63 = vcombine.high %v827_v54, %v831_v55  ;;  %v4706_v9 = vcombine.low %v827_v54, %v831_v55  ;;  %v882_v54 = vld [vmem:[#allocation9 + $0xc90] sm:$0xff] }
 0x2a4   :  { %4013 = vmatpush1.bf16.msra.mxu0 %v4648_v2  ;;  %v838_v2 = vld [vmem:[#allocation9 + $0xb30] sm:$0xff] }
 0x2a5   :  { %4177 = vmatpush1.bf16.msra.mxu1 %v4650_v5  ;;  %4014 = vmatprep.subr.bf16.mxu0 %v4657_v7  ;;  %v835_v5 = vld [vmem:[#allocation9 + $0xb18] sm:$0xff]  ;;  %v4713_v10 = vcombine.high %v834_v1, %v838_v2  ;;  %v886_v55 = vld [vmem:[#allocation9 + $0xcb0] sm:$0xff] }
 0x2a6   :  { %4178 = vmatprep.subr.bf16.mxu1 %v4659_v8  ;;  %v839_v7 = vld [vmem:[#allocation9 + $0xb38] sm:$0xff]  ;;  %v4704_v8 = vcombine.low %v826_v53, %v830_v59 }
 0x2a7   :  { %v4715_v11 = vcombine.high %v835_v5, %v839_v7  ;;  %v4714_v6 = vcombine.low %v835_v5, %v839_v7  ;;  %v890_v7 = vld [vmem:[#allocation9 + $0xcd0] sm:$0xff] }
 0x2a8   :  { %4015 = vmatpush1.bf16.msra.mxu0 %v4656_v17  ;;  %v846_v17 = vld [vmem:[#allocation9 + $0xb70] sm:$0xff] }
 0x2a9   :  { %4179 = vmatpush1.bf16.msra.mxu1 %v4658_v18  ;;  %4016 = vmatprep.subr.bf16.mxu0 %v4665_v19  ;;  %v843_v18 = vld [vmem:[#allocation9 + $0xb58] sm:$0xff]  ;;  %v4721_v61 = vcombine.high %v842_v16, %v846_v17 }
 0x2aa   :  { %4180 = vmatprep.subr.bf16.mxu1 %v4667_v20  ;;  %v847_v19 = vld [vmem:[#allocation9 + $0xb78] sm:$0xff]  ;;  %v4712_v20 = vcombine.low %v834_v1, %v838_v2  ;;  %v4761_v2 = vcombine.high %v882_v54, %v886_v55 }
 0x2ab   :  { %v4723_v21 = vcombine.high %v843_v18, %v847_v19  ;;  %v4722_v26 = vcombine.low %v843_v18, %v847_v19  ;;  %v898_v18 = vld [vmem:[#allocation9 + $0xd10] sm:$0xff] }
 0x2ac   :  { %4017 = vmatpush1.bf16.msra.mxu0 %v4664_v24  ;;  %v854_v24 = vld [vmem:[#allocation9 + $0xbb0] sm:$0xff] }
 0x2ad   :  { %4181 = vmatpush1.bf16.msra.mxu1 %v4666_v25  ;;  %4018 = vmatprep.subr.bf16.mxu0 %v4673_v45  ;;  %v851_v25 = vld [vmem:[#allocation9 + $0xb98] sm:$0xff]  ;;  %v4729_v14 = vcombine.high %v850_v22, %v854_v24  ;;  %v902_v19 = vld [vmem:[#allocation9 + $0xd30] sm:$0xff] }
 0x2ae   :  { %4182 = vmatprep.subr.bf16.mxu1 %v4675_v13  ;;  %v855_v45 = vld [vmem:[#allocation9 + $0xbb8] sm:$0xff]  ;;  %v4720_v13 = vcombine.low %v842_v16, %v846_v17 }
 0x2af   :  { %v4731_v27 = vcombine.high %v851_v25, %v855_v45  ;;  %v4730_v34 = vcombine.low %v851_v25, %v855_v45  ;;  %v910_v25 = vld [vmem:[#allocation9 + $0xd70] sm:$0xff]  ;;  %v907_v45 = vld [vmem:[#allocation9 + $0xd58] sm:$0xff] }
 0x2b0   :  { %4019 = vmatpush1.bf16.msra.mxu0 %v4672_v29  ;;  %v862_v29 = vld [vmem:[#allocation9 + $0xbf0] sm:$0xff] }
 0x2b1   :  { %4183 = vmatpush1.bf16.msra.mxu1 %v4674_v30  ;;  %4020 = vmatprep.subr.bf16.mxu0 %v4681_v31  ;;  %v859_v30 = vld [vmem:[#allocation9 + $0xbd8] sm:$0xff]  ;;  %v4737_v3 = vcombine.high %v858_v28, %v862_v29 }
 0x2b2   :  { %4184 = vmatprep.subr.bf16.mxu1 %v4683_v32  ;;  %v863_v31 = vld [vmem:[#allocation9 + $0xbf8] sm:$0xff]  ;;  %v4728_v32 = vcombine.low %v850_v22, %v854_v24  ;;  %v906_v24 = vld [vmem:[#allocation9 + $0xd50] sm:$0xff] }
 0x2b3   :  { %v4739_v36 = vcombine.high %v859_v30, %v863_v31  ;;  %v4738_v42 = vcombine.low %v859_v30, %v863_v31  ;;  %v914_v30 = vld [vmem:[#allocation9 + $0xd90] sm:$0xff] }
 0x2b4   :  { %4021 = vmatpush1.bf16.msra.mxu0 %v4680_v38  ;;  %v870_v38 = vld [vmem:[#allocation9 + $0xc30] sm:$0xff] }
 0x2b5   :  { %4185 = vmatpush1.bf16.msra.mxu1 %v4682_v56  ;;  %4022 = vmatprep.subr.bf16.mxu0 %v4689_v39  ;;  %v867_v56 = vld [vmem:[#allocation9 + $0xc18] sm:$0xff]  ;;  %v4745_v49 = vcombine.high %v866_v37, %v870_v38  ;;  %v918_v31 = vld [vmem:[#allocation9 + $0xdb0] sm:$0xff] }
 0x2b6   :  { %4186 = vmatprep.subr.bf16.mxu1 %v4691_v41  ;;  %v871_v39 = vld [vmem:[#allocation9 + $0xc38] sm:$0xff]  ;;  %v4736_v41 = vcombine.low %v858_v28, %v862_v29  ;;  %v4785_v28 = vcombine.high %v906_v24, %v910_v25 }
 0x2b7   :  { %v4747_v50 = vcombine.high %v867_v56, %v871_v39  ;;  %v4746_v53 = vcombine.low %v867_v56, %v871_v39  ;;  %v4784_v39 = vcombine.low %v906_v24, %v910_v25 }
 0x2b8   :  { %4023 = vmatpush1.bf16.msra.mxu0 %v4688_v51  ;;  %v878_v51 = vld [vmem:[#allocation9 + $0xc70] sm:$0xff] }
 0x2b9   :  { %4187 = vmatpush1.bf16.msra.mxu1 %v4690_v15  ;;  %4024 = vmatprep.subr.bf16.mxu0 %v4697_v52  ;;  %v4744_v15 = vcombine.low %v866_v37, %v870_v38  ;;  %v875_v52 = vld [vmem:[#allocation9 + $0xc58] sm:$0xff]  ;;  %v4753_v59 = vcombine.high %v874_v4, %v878_v51  ;;  %v5314_v37 = vld [vmem:[#allocation12] sm:$0xff] }
 0x2ba   :  { %4188 = vmatprep.subr.bf16.mxu1 %v4699_v43  ;;  %v879_v43 = vld [vmem:[#allocation9 + $0xc78] sm:$0xff] }
 0x2bb   :  { %v4754_v1 = vcombine.low %v875_v52, %v879_v43 }
 0x2bc   :  { %4025 = vmatpush1.bf16.msra.mxu0 %v4696_v57  ;;  %v4755_v57 = vcombine.high %v875_v52, %v879_v43  ;;  %v4263_v43 = vrot.slane %v5314_v37, %v5207_v44 }
 0x2bd   :  { %4189 = vmatpush1.bf16.msra.mxu1 %v4698_v60  ;;  %4026 = vmatprep.subr.bf16.mxu0 %v4705_v62  ;;  %v883_v60 = vld [vmem:[#allocation9 + $0xc98] sm:$0xff] }
 0x2be   :  { %4190 = vmatprep.subr.bf16.mxu1 %v4707_v63  ;;  %v887_v62 = vld [vmem:[#allocation9 + $0xcb8] sm:$0xff]  ;;  %v4752_v63 = vcombine.low %v874_v4, %v878_v51  ;;  %v922_v51 = vld [vmem:[#allocation9 + $0xdd0] sm:$0xff] }
 0x2bf   :  { %v4763_v5 = vcombine.high %v883_v60, %v887_v62 }
 0x2c0   :  { %4027 = vmatpush1.bf16.msra.mxu0 %v4704_v8  ;;  %v894_v8 = vld [vmem:[#allocation9 + $0xcf0] sm:$0xff] }
 0x2c1   :  { %4191 = vmatpush1.bf16.msra.mxu1 %v4706_v9  ;;  %4028 = vmatprep.subr.bf16.mxu0 %v4713_v10  ;;  %v891_v9 = vld [vmem:[#allocation9 + $0xcd8] sm:$0xff]  ;;  %v4769_v16 = vcombine.high %v890_v7, %v894_v8 }
 0x2c2   :  { %4192 = vmatprep.subr.bf16.mxu1 %v4715_v11  ;;  %v895_v10 = vld [vmem:[#allocation9 + $0xcf8] sm:$0xff]  ;;  %v4760_v11 = vcombine.low %v882_v54, %v886_v55 }
 0x2c3   :  { %v4771_v17 = vcombine.high %v891_v9, %v895_v10  ;;  %v923_v55 = vld [vmem:[#allocation9 + $0xdd8] sm:$0xff] }
 0x2c4   :  { %4029 = vmatpush1.bf16.msra.mxu0 %v4712_v20  ;;  %v899_v20 = vld [vmem:[#allocation9 + $0xd18] sm:$0xff] }
 0x2c5   :  { %4193 = vmatpush1.bf16.msra.mxu1 %v4714_v6  ;;  %4030 = vmatprep.subr.bf16.mxu0 %v4721_v61  ;;  %v903_v6 = vld [vmem:[#allocation9 + $0xd38] sm:$0xff]  ;;  %v4770_v61 = vcombine.low %v891_v9, %v895_v10 }
 0x2c6   :  { %4194 = vmatprep.subr.bf16.mxu1 %v4723_v21  ;;  %v4777_v21 = vcombine.high %v898_v18, %v902_v19  ;;  %v4779_v22 = vcombine.high %v899_v20, %v903_v6 }
 0x2c8   :  { %4031 = vmatpush1.bf16.msra.mxu0 %v4720_v13  ;;  %v911_v13 = vld [vmem:[#allocation9 + $0xd78] sm:$0xff] }
 0x2c9   :  { %4195 = vmatpush1.bf16.msra.mxu1 %v4722_v26  ;;  %4032 = vmatprep.subr.bf16.mxu0 %v4729_v14  ;;  %v4776_v26 = vcombine.low %v898_v18, %v902_v19  ;;  %v5308_v14 = vld [vmem:[#allocation11] sm:$0xff]  ;;  %v4787_v29 = vcombine.high %v907_v45, %v911_v13  ;;  %v934_v18 = vld [vmem:[#allocation9 + $0xe30] sm:$0xff] }
 0x2ca   :  { %4196 = vmatprep.subr.bf16.mxu1 %v4731_v27  ;;  %v4778_v27 = vcombine.low %v899_v20, %v903_v6  ;;  %v1001_v38 = vrot.slane %v5308_v14, %v5212_v46  ;;  %v1009_v56 = vrot.slane %v5308_v14, %v5215_v47  ;;  %v931_v20 = vld [vmem:[#allocation9 + $0xe18] sm:$0xff] }
 0x2cb   :  { %v935_v6 = vld [vmem:[#allocation9 + $0xe38] sm:$0xff] }
 0x2cc   :  { %4033 = vmatpush1.bf16.msra.mxu0 %v4728_v32  ;;  %v997_v32 = vrot.slane %v5308_v14, %v5207_v44 }
 0x2cd   :  { %4197 = vmatpush1.bf16.msra.mxu1 %v4730_v34  ;;  %4034 = vmatprep.subr.bf16.mxu0 %v4737_v3  ;;  %v1005_v34 = vrot.slane %v5308_v14, %v5246_v0  ;;  %v915_v3 = vld [vmem:[#allocation9 + $0xd98] sm:$0xff] }
 0x2ce   :  { %4198 = vmatprep.subr.bf16.mxu1 %v4739_v36  ;;  %v919_v36 = vld [vmem:[#allocation9 + $0xdb8] sm:$0xff] }
 0x2cf   :  { %v4795_v4 = vcombine.high %v915_v3, %v919_v36  ;;  %v4794_v44 = vcombine.low %v915_v3, %v919_v36 }
 0x2d0   :  { %4035 = vmatpush1.bf16.msra.mxu0 %v4736_v41  ;;  %v4786_v41 = vcombine.low %v907_v45, %v911_v13  ;;  %v4811_v13 = vcombine.high %v931_v20, %v935_v6 }
 0x2d1   :  { %4199 = vmatpush1.bf16.msra.mxu1 %v4738_v42  ;;  %4045 = vmatprep.subr.bf16.mxu0 %v4745_v49  ;;  %v4793_v42 = vcombine.high %v914_v30, %v918_v31 }
 0x2d2   :  { %4209 = vmatprep.subr.bf16.mxu1 %v4747_v50 }
 0x2d3   :  { %4037 = vmatmul.mubr.bf16.vlgmr.msra.gmra.mrb[12].mxu0 %v5277_v33 }
 0x2d4   :  { %4201 = vmatmul.mubr.bf16.vlgmr.msra.gmra.mrb[12].mxu1 %v5277_v33  ;;  %4046 = vmatpush1.bf16.msra.mxu0 %v4744_v15  ;;  %v4762_v33 = vcombine.low %v883_v60, %v887_v62  ;;  %v926_v15 = vld [vmem:[#allocation9 + $0xdf0] sm:$0xff]  ;;  %v4267_v62 = vrot.slane %v5314_v37, %v5212_v46 }
 0x2d5   :  { %4077 = vmatprep.mubr.bf16.mxu0 %v5279_v40  ;;  %4210 = vmatpush1.bf16.msra.mxu1 %v4746_v53  ;;  %v4801_v10 = vcombine.high %v922_v51, %v926_v15  ;;  %v930_v46 = vld [vmem:[#allocation9 + $0xe10] sm:$0xff] }
 0x2d6   :  { %4241 = vmatprep.mubr.bf16.mxu1 %v5279_v40  ;;  %4047 = vmatprep.subr.bf16.mxu0 %v4753_v59  ;;  %v4768_v40 = vcombine.low %v890_v7, %v894_v8  ;;  %v4809_v25 = vcombine.high %v930_v46, %v934_v18 }
 0x2d7   :  { %4211 = vmatprep.subr.bf16.mxu1 %v4755_v57  ;;  %v927_v57 = vld [vmem:[#allocation9 + $0xdf8] sm:$0xff] }
 0x2d8   :  { %4048 = vmatpush1.bf16.msra.mxu0 %v4752_v63  ;;  %v4802_v24 = vcombine.low %v923_v55, %v927_v57 }
 0x2d9   :  { %4212 = vmatpush1.bf16.msra.mxu1 %v4754_v1  ;;  %4049 = vmatprep.subr.bf16.mxu0 %v4761_v2 }
 0x2da   :  { %4213 = vmatprep.subr.bf16.mxu1 %v4763_v5  ;;  %v4792_v5 = vcombine.low %v914_v30, %v918_v31 }
 0x2dc   :  { %4050 = vmatpush1.bf16.msra.mxu0 %v4760_v11 }
 0x2dd   :  { %4214 = vmatpush1.bf16.msra.mxu1 %v4762_v33  ;;  %4051 = vmatprep.subr.bf16.mxu0 %v4769_v16  ;;  %v4271_v33 = vrot.slane %v5314_v37, %v5246_v0 }
 0x2de   :  { %4215 = vmatprep.subr.bf16.mxu1 %v4771_v17  ;;  %v4803_v17 = vcombine.high %v923_v55, %v927_v57  ;;  %v962_v57 = vld [vmem:[#allocation9 + $0xf10] sm:$0xff] }
 0x2e0   :  { %4052 = vmatpush1.bf16.msra.mxu0 %v4768_v40 }
 0x2e1   :  { %4216 = vmatpush1.bf16.msra.mxu1 %v4770_v61  ;;  %4053 = vmatprep.subr.bf16.mxu0 %v4777_v21  ;;  %v4275_v21 = vrot.slane %v5314_v37, %v5215_v47  ;;  %v4810_v47 = vcombine.low %v931_v20, %v935_v6  ;;  %v983_v20 = vld [vmem:[#allocation9 + $0xfb8] sm:$0xff] }
 0x2e2   :  { %4217 = vmatprep.subr.bf16.mxu1 %v4779_v22  ;;  %v4800_v22 = vcombine.low %v922_v51, %v926_v15  ;;  %v954_v51 = vld [vmem:[#allocation9 + $0xed0] sm:$0xff] }
 0x2e3   :  { %v958_v15 = vld [vmem:[#allocation9 + $0xef0] sm:$0xff] }
 0x2e4   :  { %4054 = vmatpush1.bf16.msra.mxu0 %v4776_v26  ;;  %v938_v26 = vld [vmem:[#allocation9 + $0xe50] sm:$0xff] }
 0x2e5   :  { %4218 = vmatpush1.bf16.msra.mxu1 %v4778_v27  ;;  %4055 = vmatprep.subr.bf16.mxu0 %v4785_v28  ;;  %v942_v27 = vld [vmem:[#allocation9 + $0xe70] sm:$0xff]  ;;  %v939_v28 = vld [vmem:[#allocation9 + $0xe58] sm:$0xff] }
 0x2e6   :  { %v3751_v49 = vpop.f32.mrb[8].mxu0  ;;  %v3915_v50 = vpop.f32.mrb[8].mxu1  ;;  %4219 = vmatprep.subr.bf16.mxu1 %v4787_v29  ;;  %v943_v29 = vld [vmem:[#allocation9 + $0xe78] sm:$0xff] }
 0x2e7   :  { %v4869_v52 = vadd.f32 %v3751_v49, %v997_v32  ;;  %v4871_v53 = vadd.f32 %v3915_v50, %v1005_v34  ;;  %v3753_v59 = vpop.f32.mrb[9].mxu0  ;;  %v3917_v54 = vpop.f32.mrb[9].mxu1  ;;  %v4808_v32 = vcombine.low %v930_v46, %v934_v18  ;;  %v4817_v34 = vcombine.high %v938_v26, %v942_v27  ;;  %v978_v46 = vld [vmem:[#allocation9 + $0xf90] sm:$0xff] }
 0x2e8   :  { %v4870_v60 = vadd.f32 %v3753_v59, %v1001_v38  ;;  %v4872_v63 = vadd.f32 %v3917_v54, %v1009_v56  ;;  %v3755_v1 = vpop.f32.mrb[10].mxu0  ;;  %v3919_v2 = vpop.f32.mrb[10].mxu1  ;;  %4056 = vmatpush1.bf16.msra.mxu0 %v4784_v39  ;;  %v4819_v36 = vcombine.high %v939_v28, %v943_v29  ;;  %v946_v38 = vld [vmem:[#allocation9 + $0xe90] sm:$0xff]  ;;  %v947_v39 = vld [vmem:[#allocation9 + $0xe98] sm:$0xff]  ;;  %v4818_v49 = vcombine.low %v939_v28, %v943_v29 }
 0x2e9   :  { %v4250_v7 = vmax.f32 %v4869_v52, 0.0  ;;  %4220 = vmatpush1.bf16.msra.mxu1 %v4786_v41  ;;  %v3756_v8 = vpop.f32.mrb[11].mxu0  ;;  %v3920_v9 = vpop.f32.mrb[11].mxu1  ;;  %4057 = vmatprep.subr.bf16.mxu0 %v4793_v42  ;;  %v4252_v11 = vmax.f32 %v4871_v53, 0.0  ;;  %v950_v56 = vld [vmem:[#allocation9 + $0xeb0] sm:$0xff]  ;;  %v951_v41 = vld [vmem:[#allocation9 + $0xeb8] sm:$0xff]  ;;  %v4816_v42 = vcombine.low %v938_v26, %v942_v27  ;;  %v4833_v54 = vcombine.high %v954_v51, %v958_v15 }
 0x2ea   :  { %v4251_v16 = vmax.f32 %v4870_v60, 0.0  ;;  %4221 = vmatprep.subr.bf16.mxu1 %v4795_v4  ;;  %v4253_v61 = vmax.f32 %v4872_v63, 0.0  ;;  %v4825_v50 = vcombine.high %v946_v38, %v950_v56  ;;  %v4827_v4 = vcombine.high %v947_v39, %v951_v41  ;;  %v955_v52 = vld [vmem:[#allocation9 + $0xed8] sm:$0xff]  ;;  %v966_v60 = vld [vmem:[#allocation9 + $0xf30] sm:$0xff] }
 0x2eb   :  { %v4300_v19 = vmul.f32 %v4263_v43, %v4250_v7  ;;  %v4302_v0 = vmul.f32 %v4271_v33, %v4252_v11  ;;  %v959_v43 = vld [vmem:[#allocation9 + $0xef8] sm:$0xff]  ;;  %v4824_v53 = vcombine.low %v946_v38, %v950_v56  ;;  %v4826_v59 = vcombine.low %v947_v39, %v951_v41  ;;  %v970_v8 = vld [vmem:[#allocation9 + $0xf50] sm:$0xff] }
 0x2ec   :  { %v4301_v40 = vmul.f32 %v4267_v62, %v4251_v16  ;;  %4058 = vmatpush1.bf16.msra.mxu0 %v4792_v5  ;;  %v4303_v30 = vmul.f32 %v4275_v21, %v4253_v61  ;;  %v4835_v55 = vcombine.high %v955_v52, %v959_v43  ;;  %v963_v62 = vld [vmem:[#allocation9 + $0xf18] sm:$0xff]  ;;  %v4832_v1 = vcombine.low %v954_v51, %v958_v15  ;;  %v974_v9 = vld [vmem:[#allocation9 + $0xf70] sm:$0xff] }
 0x2ed   :  { %4222 = vmatpush1.bf16.msra.mxu1 %v4794_v44  ;;  %4059 = vmatprep.subr.bf16.mxu0 %v4801_v10  ;;  %v967_v63 = vld [vmem:[#allocation9 + $0xf38] sm:$0xff]  ;;  %v4834_v2 = vcombine.low %v955_v52, %v959_v43  ;;  %v4841_v5 = vcombine.high %v962_v57, %v966_v60  ;;  %v4840_v11 = vcombine.low %v962_v57, %v966_v60  ;;  %v982_v18 = vld [vmem:[#allocation9 + $0xfb0] sm:$0xff] }
 0x2ee   :  { %v4308_v45 = vadd.f32 %v4301_v40, %v4300_v19  ;;  %4223 = vmatprep.subr.bf16.mxu1 %v4803_v17  ;;  %v4843_v7 = vcombine.high %v963_v62, %v967_v63  ;;  %v971_v44 = vld [vmem:[#allocation9 + $0xf58] sm:$0xff]  ;;  %v4842_v33 = vcombine.low %v963_v62, %v967_v63  ;;  %v4849_v16 = vcombine.high %v970_v8, %v974_v9 }
 0x2ef   :  { %v975_v10 = vld [vmem:[#allocation9 + $0xf78] sm:$0xff]  ;;  %v4848_v6 = vcombine.low %v970_v8, %v974_v9  ;;  %v4857_v61 = vcombine.high %v978_v46, %v982_v18  ;;  %v4279_v38 = vrot.slane %v5314_v37, %v5266_v48 }
 0x2f0   :  { %v4309_v31 = vadd.f32 %v4308_v45, %v4302_v0  ;;  %4060 = vmatpush1.bf16.msra.mxu0 %v4800_v22  ;;  %v4851_v17 = vcombine.high %v971_v44, %v975_v10  ;;  %v979_v19 = vld [vmem:[#allocation9 + $0xf98] sm:$0xff]  ;;  %v4850_v40 = vcombine.low %v971_v44, %v975_v10  ;;  %v986_v22 = vld [vmem:[#allocation9 + $0xfd0] sm:$0xff]  ;;  %v4856_v45 = vcombine.low %v978_v46, %v982_v18 }
 0x2f1   :  { %4224 = vmatpush1.bf16.msra.mxu1 %v4802_v24  ;;  %4061 = vmatprep.subr.bf16.mxu0 %v4809_v25  ;;  %v4859_v21 = vcombine.high %v979_v19, %v983_v20  ;;  %v990_v24 = vld [vmem:[#allocation9 + $0xff0] sm:$0xff]  ;;  %v987_v25 = vld [vmem:[#allocation9 + $0xfd8] sm:$0xff] }
 0x2f2   :  { %v5328_v3 = vadd.f32 %v4309_v31, %v4303_v30  ;;  %4225 = vmatprep.subr.bf16.mxu1 %v4811_v13  ;;  %v991_v0 = vld [vmem:[#allocation9 + $0xff8] sm:$0xff]  ;;  %v4858_v13 = vcombine.low %v979_v19, %v983_v20  ;;  %v4865_v26 = vcombine.high %v986_v22, %v990_v24  ;;  %v4864_v28 = vcombine.low %v986_v22, %v990_v24 }
 0x2f3   :  { %v4867_v27 = vcombine.high %v987_v25, %v991_v0  ;;  %v4866_v29 = vcombine.low %v987_v25, %v991_v0  ;;  %v1013_v30 = vrot.slane %v5308_v14, %v5266_v48  ;;  %v1021_v31 = vrot.slane %v5308_v14, %v5286_v35 }
 0x2f4   :  { %4062 = vmatpush1.bf16.msra.mxu0 %v4808_v32  ;;  %v1017_v32 = vrot.slane %v5308_v14, %v5249_v12  ;;  %v4287_v48 = vrot.slane %v5314_v37, %v5286_v35 }
 0x2f5   :  { %4226 = vmatpush1.bf16.msra.mxu1 %v4810_v47  ;;  %4063 = vmatprep.subr.bf16.mxu0 %v4817_v34  ;;  %v1025_v47 = vrot.slane %v5308_v14, %v5269_v58 }
 0x2f6   :  { %4227 = vmatprep.subr.bf16.mxu1 %v4819_v36 }
 0x2f8   :  { %4064 = vmatpush1.bf16.msra.mxu0 %v4816_v42  ;;  %v4283_v42 = vrot.slane %v5314_v37, %v5249_v12  ;;  %v4291_v12 = vrot.slane %v5314_v37, %v5269_v58 }
 0x2f9   :  { %4228 = vmatpush1.bf16.msra.mxu1 %v4818_v49  ;;  %4065 = vmatprep.subr.bf16.mxu0 %v4825_v50 }
 0x2fa   :  { %4229 = vmatprep.subr.bf16.mxu1 %v4827_v4 }
 0x2fc   :  { %4066 = vmatpush1.bf16.msra.mxu0 %v4824_v53 }
 0x2fd   :  { %4230 = vmatpush1.bf16.msra.mxu1 %v4826_v59  ;;  %4067 = vmatprep.subr.bf16.mxu0 %v4833_v54 }
 0x2fe   :  { %4231 = vmatprep.subr.bf16.mxu1 %v4835_v55 }
 0x300   :  { %4068 = vmatpush1.bf16.msra.mxu0 %v4832_v1 }
 0x301   :  { %4232 = vmatpush1.bf16.msra.mxu1 %v4834_v2  ;;  %4069 = vmatprep.subr.bf16.mxu0 %v4841_v5  ;;  %v4318_v5 = vstv %s5361_s6 }
 0x302   :  { %4233 = vmatprep.subr.bf16.mxu1 %v4843_v7 }
 0x304   :  { %4070 = vmatpush1.bf16.msra.mxu0 %v4840_v11 }
 0x305   :  { %4234 = vmatpush1.bf16.msra.mxu1 %v4842_v33  ;;  %4071 = vmatprep.subr.bf16.mxu0 %v4849_v16 }
 0x306   :  { %4235 = vmatprep.subr.bf16.mxu1 %v4851_v17 }
 0x308   :  { %4072 = vmatpush1.bf16.msra.mxu0 %v4848_v6 }
 0x309   :  { %4236 = vmatpush1.bf16.msra.mxu1 %v4850_v40  ;;  %4073 = vmatprep.subr.bf16.mxu0 %v4857_v61 }
 0x30a   :  { %4237 = vmatprep.subr.bf16.mxu1 %v4859_v21 }
 0x30c   :  { %4074 = vmatpush1.bf16.msra.mxu0 %v4856_v45 }
 0x30d   :  { %4238 = vmatpush1.bf16.msra.mxu1 %v4858_v13  ;;  %4075 = vmatprep.subr.bf16.mxu0 %v4865_v26 }
 0x30e   :  { %4239 = vmatprep.subr.bf16.mxu1 %v4867_v27 }
 0x310   :  { %4076 = vmatpush1.bf16.msra.mxu0 %v4864_v28 }
 0x311   :  { %4240 = vmatpush1.bf16.msra.mxu1 %v4866_v29 }
 0x313   :  { %4078 = vmatmul.mubr.bf16.vlgmr.msra.gmra.mrb[12].mxu0 %v5290_v23 }
 0x314   :  { %4242 = vmatmul.mubr.bf16.vlgmr.msra.gmra.mrb[12].mxu1 %v5290_v23 }
 0x3e6   :  { %v4079_v34 = vpop.f32.mrb[12].mxu0 }
 0x3e7   :  { %v4873_v36 = vadd.f32 %v4079_v34, %v1013_v30  ;;  %v4243_v56 = vpop.f32.mrb[12].mxu1  ;;  %v4081_v39 = vpop.f32.mrb[13].mxu0 }
 0x3e8   :  { %v4875_v23 = vadd.f32 %v4243_v56, %v1021_v31  ;;  %v4874_v41 = vadd.f32 %v4081_v39, %v1017_v32  ;;  %v4245_v49 = vpop.f32.mrb[13].mxu1  ;;  %v4083_v50 = vpop.f32.mrb[14].mxu0 }
 0x3e9   :  { %v4254_v4 = vmax.f32 %v4873_v36, 0.0  ;;  %v4876_v51 = vadd.f32 %v4245_v49, %v1025_v47  ;;  %v4247_v15 = vpop.f32.mrb[14].mxu1  ;;  %v4084_v52 = vpop.f32.mrb[15].mxu0 }
 0x3ea   :  { %v4255_v43 = vmax.f32 %v4874_v41, 0.0  ;;  %v4248_v14 = vpop.f32.mrb[15].mxu1  ;;  %v4256_v59 = vmax.f32 %v4875_v23, 0.0 }
 0x3eb   :  { %v4304_v53 = vmul.f32 %v4279_v38, %v4254_v4  ;;  %v4257_v57 = vmax.f32 %v4876_v51, 0.0 }
 0x3ec   :  { %v4305_v54 = vmul.f32 %v4283_v42, %v4255_v43  ;;  %v4306_v60 = vmul.f32 %v4287_v48, %v4256_v59 }
 0x3ed   :  { %v4311_v55 = vadd.f32 %v5328_v3, %v4304_v53  ;;  %v4307_v63 = vmul.f32 %v4291_v12, %v4257_v57 }
 0x3ef   :  { %v4312_v62 = vadd.f32 %v4311_v55, %v4305_v54 }
 0x3f1   :  { %v4313_v1 = vadd.f32 %v4312_v62, %v4306_v60 }
 0x3f3   :  { %v4314_v2 = vadd.f32 %v4313_v1, %v4307_v63 }
 0x3f5   :  { %4315 = vadd.xlane.f32.xlu0 %v4314_v2 }
 0x482   :  { %v4316_v7 = vpop.xlane.xlu0 %4315 }
 0x483   :  { %v4319_v8 = vadd.f32 %v4318_v5, %v4316_v7 }
 0x485   :  { %v4868_v35 = vmul.f32 -1.442695, %v4319_v8 }
 0x487   :  { %4934 = vpow2.f32 %v4868_v35 }
 0x491   :  { %v4935_v9 = vpop.eup %4934 }
 0x492   :  { %v4323_v3 = vadd.f32 1.0, %v4935_v9 }
 0x494   :  { %4936 = vrcp.f32 %v4323_v3 }
 0x49e   :  { %v4937_v44 = vpop.eup %4936 }
 0x49f   :  { %4327 = vst.msk [vmem:[%s5362_s7] sm:$0xff] %vm4326_vm1, %v4937_v44 }
 0x4a0   :  { %4332 = vsyncpa [#allocation5], 1 }
 0x4a1   :  { %4333 = vsyncpa [#allocation7], 1 }
 0x4a2   :  { %4334 = vsyncpa [#allocation10], 1 }
 0x4a3   :  { %4335 = vsyncpa [#allocation13], 1 }

</bundles_post_ra>
